<compile_context>
chip_gen: v7x
topology: tpu7x:2x2x1
jax: 0.10.0
libtpu: 0.0.40
codegen_flags: <defaults>
</compile_context>

<pallas_src>
import functools

import jax
import jax.numpy as jnp
from jax import lax
from jax.experimental import pallas as pl
from jax.experimental.pallas import tpu as pltpu


LANE = 128


def _round_up(x, m):
    return (x + m - 1) // m * m


def _pad_to(a, axis, target):
    pad = target - a.shape[axis]
    if pad <= 0:
        return a
    widths = [(0, 0)] * a.ndim
    widths[axis] = (0, pad)
    return jnp.pad(a, widths)


def _fold_bn(gamma, beta, mean, var, eps=1e-5):
    scale = gamma / jnp.sqrt(var + eps)
    bias = beta - mean * scale
    return scale[None, :], bias[None, :]


def _bottleneck_kernel(x_ref, wcol_ref, w1_ref, s1_ref, b1_ref,
                       w2_ref, s2_ref, b2_ref,
                       w3_ref, s3_ref, b3_ref, out_ref, *, H, W):
    # Shapes (channel dims padded to multiples of 128):
    #   x_ref   : (1, H*W, Cp)   bf16
    #   wcol_ref: (H*W, 1)       f32   column index w of each flat spatial row
    #   w1_ref  : (Cp, Wp)       bf16  1x1 conv as matmul
    #   w2_ref  : (3, 3*Wp, Wp)  bf16  3x3 conv, kw taps folded into K
    #   w3_ref  : (Wp, Cp)       bf16  1x1 conv as matmul
    #   s*/b*   : (1, C)         f32   folded BN scale / bias
    #   out_ref : (1, H*W, Cp)   bf16
    HW = H * W
    Wp = w1_ref.shape[1]
    f32 = jnp.float32
    bf16 = jnp.bfloat16

    x2d = x_ref[0]                                            # (HW, Cp) bf16

    # ---- conv1 (1x1) + bn1 + relu --------------------------------------
    y1 = jnp.dot(x2d, w1_ref[...], preferred_element_type=f32)
    y1 = jnp.maximum(y1 * s1_ref[...] + b1_ref[...], 0.0)
    y1b = y1.astype(bf16)                                     # (HW, Wp)

    # ---- conv2 (3x3, padding=1, stride=1) + bn2 + relu ------------------
    # kw taps folded into K: cat = [in[.,w-1] | in[.,w] | in[.,w+1]]  (HW, 3Wp)
    # kh taps -> three row-shifted copies of cat -> 3 matmuls with K = 3*Wp.
    m_left = (wcol_ref[...] > 0.5).astype(bf16)               # 0 at w == 0
    m_right = (wcol_ref[...] < (W - 1.5)).astype(bf16)        # 0 at w == W-1
    zrow = jnp.zeros((1, Wp), bf16)
    left = jnp.concatenate([zrow, y1b[:HW - 1, :]], axis=0) * m_left   # in[h, w-1]
    right = jnp.concatenate([y1b[1:, :], zrow], axis=0) * m_right      # in[h, w+1]
    cat = jnp.concatenate([left, y1b, right], axis=-1)                 # (HW, 3Wp)
    zblk = jnp.zeros((W, 3 * Wp), bf16)
    top = jnp.concatenate([zblk, cat[:HW - W, :]], axis=0)             # row h-1
    bot = jnp.concatenate([cat[W:, :], zblk], axis=0)                  # row h+1

    acc = jnp.dot(top, w2_ref[0], preferred_element_type=f32)
    acc = acc + jnp.dot(cat, w2_ref[1], preferred_element_type=f32)
    acc = acc + jnp.dot(bot, w2_ref[2], preferred_element_type=f32)
    y2 = jnp.maximum(acc * s2_ref[...] + b2_ref[...], 0.0)             # (HW, Wp)

    # ---- conv3 (1x1) + bn3 + residual add + relu ------------------------
    y3 = jnp.dot(y2.astype(bf16), w3_ref[...], preferred_element_type=f32)
    y3 = y3 * s3_ref[...] + b3_ref[...]
    out_ref[0] = jnp.maximum(y3 + x2d.astype(f32), 0.0).astype(bf16)


def bottleneck_forward(x_nchw, params, eps=1e-5):
    """Runs the Bottleneck block (eval-mode BN) on an NCHW float32 input."""
    x = jnp.transpose(x_nchw, (0, 2, 3, 1))                           # NHWC
    N, H, W, Cin = x.shape

    # conv weights rearranged for in-kernel matmuls
    w1 = jnp.transpose(params["conv1_w"][:, :, 0, 0], (1, 0))         # (Cin, width)
    w2 = jnp.transpose(params["conv2_w"], (2, 3, 1, 0))               # (kh, kw, in, out)
    w3 = jnp.transpose(params["conv3_w"][:, :, 0, 0], (1, 0))         # (width, Cout)
    width = w1.shape[1]
    Cout = w3.shape[1]
    assert Cin == Cout, "identity residual requires inplanes == planes * 4"

    Cp = _round_up(Cin, LANE)
    Wp = _round_up(width, LANE)
    HW = H * W

    # Zero-padded channels stay exactly zero end-to-end (weights and folded BN
    # scale/bias are zero-padded too), so padded lanes never pollute results.
    x_p = _pad_to(x, 3, Cp).reshape(N, HW, Cp).astype(jnp.bfloat16)
    w1_p = _pad_to(_pad_to(w1, 0, Cp), 1, Wp).astype(jnp.bfloat16)
    w2_p = _pad_to(_pad_to(w2, 2, Wp), 3, Wp)                          # (3,3,Wp,Wp)
    w2_p = w2_p.reshape(3, 3 * Wp, Wp).astype(jnp.bfloat16)            # kw folded into K
    w3_p = _pad_to(_pad_to(w3, 0, Wp), 1, Cp).astype(jnp.bfloat16)

    s1, b1 = _fold_bn(*params["bn1"], eps)
    s2, b2 = _fold_bn(*params["bn2"], eps)
    s3, b3 = _fold_bn(*params["bn3"], eps)
    s1, b1 = _pad_to(s1, 1, Wp), _pad_to(b1, 1, Wp)
    s2, b2 = _pad_to(s2, 1, Wp), _pad_to(b2, 1, Wp)
    s3, b3 = _pad_to(s3, 1, Cp), _pad_to(b3, 1, Cp)

    # column index (w) of every flat spatial row, for conv2 boundary masking
    wcol = jnp.tile(jnp.arange(W, dtype=jnp.float32), H).reshape(HW, 1)

    # VMEM budget: bf16 double-buffered x/out blocks + bf16 weights + in-kernel
    # temporaries + margin, capped at 32 MiB (fits v7x's 64 MiB per TensorCore).
    act_blk = HW * Cp * 2
    w_bytes = (Cp * Wp + 9 * Wp * Wp + Wp * Cp) * 2 + (4 * Wp + 2 * Cp) * 4 + HW * 4
    tmp_bytes = HW * (3 * Wp) * 2 * 3 + HW * Wp * 12 + HW * Cp * 8
    vmem_limit = max(16 * 1024 * 1024,
                     min(32 * 1024 * 1024,
                         4 * act_blk + 2 * w_bytes + tmp_bytes + 4 * 1024 * 1024))

    flops = 2 * N * HW * (Cp * Wp + 9 * Wp * Wp + Wp * Cp)
    bytes_accessed = 2 * N * HW * Cp * 2 + w_bytes

    kernel = functools.partial(_bottleneck_kernel, H=H, W=W)

    out_flat = pl.pallas_call(
        kernel,
        out_shape=jax.ShapeDtypeStruct((N, HW, Cp), jnp.bfloat16),
        grid=(N,),
        in_specs=[
            pl.BlockSpec((1, HW, Cp), lambda n: (n, 0, 0)),
            pl.BlockSpec((HW, 1), lambda n: (0, 0)),
            pl.BlockSpec((Cp, Wp), lambda n: (0, 0)),
            pl.BlockSpec((1, Wp), lambda n: (0, 0)),
            pl.BlockSpec((1, Wp), lambda n: (0, 0)),
            pl.BlockSpec((3, 3 * Wp, Wp), lambda n: (0, 0, 0)),
            pl.BlockSpec((1, Wp), lambda n: (0, 0)),
            pl.BlockSpec((1, Wp), lambda n: (0, 0)),
            pl.BlockSpec((Wp, Cp), lambda n: (0, 0)),
            pl.BlockSpec((1, Cp), lambda n: (0, 0)),
            pl.BlockSpec((1, Cp), lambda n: (0, 0)),
        ],
        out_specs=pl.BlockSpec((1, HW, Cp), lambda n: (n, 0, 0)),
        compiler_params=pltpu.CompilerParams(
            dimension_semantics=("parallel",),
            vmem_limit_bytes=int(vmem_limit)),
        cost_estimate=pl.CostEstimate(
            flops=int(flops), transcendentals=0,
            bytes_accessed=int(bytes_accessed)),
    )(x_p, wcol, w1_p, s1, b1, w2_p, s2, b2, w3_p, s3, b3)

    out = out_flat.reshape(N, H, W, Cp)[..., :Cout]
    # Return float32 NCHW to preserve the original module's dtype contract;
    # drop this cast if the consumer accepts bf16.
    return jnp.transpose(out, (0, 3, 1, 2)).astype(jnp.float32)


# --------------------- pure-JAX reference (NCHW) -------------------------
def bottleneck_reference(x, params, eps=1e-5):
    def bn(y, g, b, m, v):
        g, b, m, v = (t[None, :, None, None] for t in (g, b, m, v))
        return g * (y - m) / jnp.sqrt(v + eps) + b

    dn = ("NCHW", "OIHW", "NCHW")
    y = lax.conv_general_dilated(x, params["conv1_w"], (1, 1), "VALID",
                                 dimension_numbers=dn)
    y = jax.nn.relu(bn(y, *params["bn1"]))
    y = lax.conv_general_dilated(y, params["conv2_w"], (1, 1),
                                 [(1, 1), (1, 1)], dimension_numbers=dn)
    y = jax.nn.relu(bn(y, *params["bn2"]))
    y = lax.conv_general_dilated(y, params["conv3_w"], (1, 1), "VALID",
                                 dimension_numbers=dn)
    y = bn(y, *params["bn3"])
    return jax.nn.relu(y + x)


def make_params(key, inplanes, planes, base_width=64, group=1):
    width = int(planes * (base_width / 64.0)) * group
    cout = planes * 4
    ks = jax.random.split(key, 6)

    def bn_params(k, c):
        k0, k1, k2, k3 = jax.random.split(k, 4)
        gamma = jax.random.uniform(k0, (c,), jnp.float32, 0.5, 1.5)
        beta = jax.random.normal(k1, (c,), jnp.float32) * 0.1
        mean = jax.random.normal(k2, (c,), jnp.float32) * 0.1
        var = jax.random.uniform(k3, (c,), jnp.float32, 0.5, 1.5)
        return (gamma, beta, mean, var)

    return {
        "conv1_w": jax.random.normal(ks[0], (width, inplanes, 1, 1), jnp.float32) * 0.1,
        "conv2_w": jax.random.normal(ks[1], (width, width, 3, 3), jnp.float32) * 0.1,
        "conv3_w": jax.random.normal(ks[2], (cout, width, 1, 1), jnp.float32) * 0.1,
        "bn1": bn_params(ks[3], width),
        "bn2": bn_params(ks[4], width),
        "bn3": bn_params(ks[5], cout),
    }


if __name__ == "__main__":
    key = jax.random.PRNGKey(0)
    k_x, k_p = jax.random.split(key)

    # Bottleneck(inplanes=16, planes=4) -> width=4, out_channels=16 (identity residual)
    N, inplanes, planes, H, W = 2, 16, 4, 8, 8
    x = jax.random.normal(k_x, (N, inplanes, H, W), jnp.float32)
    params = make_params(k_p, inplanes, planes)

    out = jax.block_until_ready(bottleneck_forward(x, params))
    ref = jax.block_until_ready(bottleneck_reference(x, params))

    assert out.shape == ref.shape == (N, planes * 4, H, W)
    # bf16 activations (input, intermediates, output) with f32 MXU accumulation
    # -> looser tolerance than a pure-f32 pipeline.
    assert jnp.allclose(out, ref, atol=5e-2, rtol=5e-2), \
        f"max abs err = {jnp.max(jnp.abs(out - ref))}"

    print("KERNEL_OK")
</pallas_src>

<mosaic_0001>
module attributes {stable_mosaic.version = 11 : i64} {
  func.func @_bottleneck_kernel(%arg0: i32, %arg1: memref<1x64x128xbf16, #tpu.memory_space<vmem>>, %arg2: memref<64x1xf32, #tpu.memory_space<vmem>>, %arg3: memref<128x128xbf16, #tpu.memory_space<vmem>>, %arg4: memref<1x128xf32, #tpu.memory_space<vmem>>, %arg5: memref<1x128xf32, #tpu.memory_space<vmem>>, %arg6: memref<3x384x128xbf16, #tpu.memory_space<vmem>>, %arg7: memref<1x128xf32, #tpu.memory_space<vmem>>, %arg8: memref<1x128xf32, #tpu.memory_space<vmem>>, %arg9: memref<128x128xbf16, #tpu.memory_space<vmem>>, %arg10: memref<1x128xf32, #tpu.memory_space<vmem>>, %arg11: memref<1x128xf32, #tpu.memory_space<vmem>>, %arg12: memref<1x64x128xbf16, #tpu.memory_space<vmem>>) attributes {dimension_semantics = [#tpu.dimension_semantics<parallel>], iteration_bounds = array<i64: 2>, scalar_prefetch = 0 : i64, scratch_operands = 0 : i64, tpu.core_type = #tpu.core_type<tc>, window_params = [{transform_indices = @transform_0, window_bounds = array<i64: 1, 64, 128>}, {pipeline_mode = #tpu.pipeline_mode<synchronous>, transform_indices = @transform_1, window_bounds = array<i64: 64, 1>}, {pipeline_mode = #tpu.pipeline_mode<synchronous>, transform_indices = @transform_2, window_bounds = array<i64: 128, 128>}, {pipeline_mode = #tpu.pipeline_mode<synchronous>, transform_indices = @transform_3, window_bounds = array<i64: 1, 128>}, {pipeline_mode = #tpu.pipeline_mode<synchronous>, transform_indices = @transform_4, window_bounds = array<i64: 1, 128>}, {pipeline_mode = #tpu.pipeline_mode<synchronous>, transform_indices = @transform_5, window_bounds = array<i64: 3, 384, 128>}, {pipeline_mode = #tpu.pipeline_mode<synchronous>, transform_indices = @transform_6, window_bounds = array<i64: 1, 128>}, {pipeline_mode = #tpu.pipeline_mode<synchronous>, transform_indices = @transform_7, window_bounds = array<i64: 1, 128>}, {pipeline_mode = #tpu.pipeline_mode<synchronous>, transform_indices = @transform_8, window_bounds = array<i64: 128, 128>}, {pipeline_mode = #tpu.pipeline_mode<synchronous>, transform_indices = @transform_9, window_bounds = array<i64: 1, 128>}, {pipeline_mode = #tpu.pipeline_mode<synchronous>, transform_indices = @transform_10, window_bounds = array<i64: 1, 128>}, {transform_indices = @transform_11, window_bounds = array<i64: 1, 64, 128>}]} {
    %c0 = arith.constant 0 : index
    %c0_0 = arith.constant 0 : index
    %c0_1 = arith.constant 0 : index
    %0 = vector.load %arg1[%c0, %c0_0, %c0_1] : memref<1x64x128xbf16, #tpu.memory_space<vmem>>, vector<1x64x128xbf16>
    %1 = vector.shape_cast %0 : vector<1x64x128xbf16> to vector<64x128xbf16>
    %c0_2 = arith.constant 0 : index
    %c0_3 = arith.constant 0 : index
    %2 = vector.load %arg3[%c0_2, %c0_3] : memref<128x128xbf16, #tpu.memory_space<vmem>>, vector<128x128xbf16>
    %cst = arith.constant dense<0.000000e+00> : vector<64x128xf32>
    %3 = tpu.matmul %1, %2, %cst {dimension_numbers = #tpu.dot_dimension_numbers<[1], [0], [0], [1], [0, 0, 1, 1], [], []>} : vector<64x128xbf16>, vector<128x128xbf16>, vector<64x128xf32> -> vector<64x128xf32>
    %c0_4 = arith.constant 0 : index
    %c0_5 = arith.constant 0 : index
    %4 = vector.load %arg4[%c0_4, %c0_5] : memref<1x128xf32, #tpu.memory_space<vmem>>, vector<1x128xf32>
    %5 = vector.broadcast %4 : vector<1x128xf32> to vector<64x128xf32>
    %6 = arith.mulf %3, %5 : vector<64x128xf32>
    %c0_6 = arith.constant 0 : index
    %c0_7 = arith.constant 0 : index
    %7 = vector.load %arg5[%c0_6, %c0_7] : memref<1x128xf32, #tpu.memory_space<vmem>>, vector<1x128xf32>
    %8 = vector.broadcast %7 : vector<1x128xf32> to vector<64x128xf32>
    %9 = arith.addf %6, %8 : vector<64x128xf32>
    %cst_8 = arith.constant 0.000000e+00 : f32
    %10 = vector.broadcast %cst_8 : f32 to vector<64x128xf32>
    %11 = arith.maximumf %9, %10 : vector<64x128xf32>
    %12 = arith.truncf %11 : vector<64x128xf32> to vector<64x128xbf16>
    %c0_9 = arith.constant 0 : index
    %c0_10 = arith.constant 0 : index
    %13 = vector.load %arg2[%c0_9, %c0_10] : memref<64x1xf32, #tpu.memory_space<vmem>>, vector<64x1xf32>
    %cst_11 = arith.constant 5.000000e-01 : f32
    %14 = vector.broadcast %cst_11 : f32 to vector<64x1xf32>
    %15 = arith.cmpf ogt, %13, %14 : vector<64x1xf32>
    %16 = arith.extui %15 : vector<64x1xi1> to vector<64x1xi32>
    %17 = arith.sitofp %16 : vector<64x1xi32> to vector<64x1xf32>
    %18 = arith.truncf %17 : vector<64x1xf32> to vector<64x1xbf16>
    %c0_12 = arith.constant 0 : index
    %c0_13 = arith.constant 0 : index
    %19 = vector.load %arg2[%c0_12, %c0_13] : memref<64x1xf32, #tpu.memory_space<vmem>>, vector<64x1xf32>
    %cst_14 = arith.constant 6.500000e+00 : f32
    %20 = vector.broadcast %cst_14 : f32 to vector<64x1xf32>
    %21 = arith.cmpf olt, %19, %20 : vector<64x1xf32>
    %22 = arith.extui %21 : vector<64x1xi1> to vector<64x1xi32>
    %23 = arith.sitofp %22 : vector<64x1xi32> to vector<64x1xf32>
    %24 = arith.truncf %23 : vector<64x1xf32> to vector<64x1xbf16>
    %cst_15 = arith.constant 0.000000e+00 : bf16
    %25 = vector.broadcast %cst_15 : bf16 to vector<1x128xbf16>
    %26 = vector.extract_strided_slice %12 {offsets = [0, 0], sizes = [63, 128], strides = [1, 1]} : vector<64x128xbf16> to vector<63x128xbf16>
    %27 = tpu.concatenate %25, %26 in 0 : vector<1x128xbf16>, vector<63x128xbf16> -> vector<64x128xbf16>
    %28 = vector.broadcast %18 : vector<64x1xbf16> to vector<64x128xbf16>
    %29 = arith.mulf %27, %28 : vector<64x128xbf16>
    %30 = vector.extract_strided_slice %12 {offsets = [1, 0], sizes = [63, 128], strides = [1, 1]} : vector<64x128xbf16> to vector<63x128xbf16>
    %31 = tpu.concatenate %30, %25 in 0 : vector<63x128xbf16>, vector<1x128xbf16> -> vector<64x128xbf16>
    %32 = vector.broadcast %24 : vector<64x1xbf16> to vector<64x128xbf16>
    %33 = arith.mulf %31, %32 : vector<64x128xbf16>
    %34 = tpu.concatenate %29, %12, %33 in 1 : vector<64x128xbf16>, vector<64x128xbf16>, vector<64x128xbf16> -> vector<64x384xbf16>
    %cst_16 = arith.constant 0.000000e+00 : bf16
    %35 = vector.broadcast %cst_16 : bf16 to vector<8x384xbf16>
    %36 = vector.extract_strided_slice %34 {offsets = [0, 0], sizes = [56, 384], strides = [1, 1]} : vector<64x384xbf16> to vector<56x384xbf16>
    %37 = tpu.concatenate %35, %36 in 0 : vector<8x384xbf16>, vector<56x384xbf16> -> vector<64x384xbf16>
    %38 = vector.extract_strided_slice %34 {offsets = [8, 0], sizes = [56, 384], strides = [1, 1]} : vector<64x384xbf16> to vector<56x384xbf16>
    %39 = tpu.concatenate %38, %35 in 0 : vector<56x384xbf16>, vector<8x384xbf16> -> vector<64x384xbf16>
    %c0_17 = arith.constant 0 : index
    %c0_18 = arith.constant 0 : index
    %c0_19 = arith.constant 0 : index
    %40 = vector.load %arg6[%c0_17, %c0_18, %c0_19] : memref<3x384x128xbf16, #tpu.memory_space<vmem>>, vector<1x384x128xbf16>
    %41 = vector.shape_cast %40 : vector<1x384x128xbf16> to vector<384x128xbf16>
    %cst_20 = arith.constant dense<0.000000e+00> : vector<64x128xf32>
    %42 = tpu.matmul %37, %41, %cst_20 {dimension_numbers = #tpu.dot_dimension_numbers<[1], [0], [0], [1], [0, 0, 1, 1], [], []>} : vector<64x384xbf16>, vector<384x128xbf16>, vector<64x128xf32> -> vector<64x128xf32>
    %c1 = arith.constant 1 : index
    %c0_21 = arith.constant 0 : index
    %c0_22 = arith.constant 0 : index
    %43 = vector.load %arg6[%c1, %c0_21, %c0_22] : memref<3x384x128xbf16, #tpu.memory_space<vmem>>, vector<1x384x128xbf16>
    %44 = vector.shape_cast %43 : vector<1x384x128xbf16> to vector<384x128xbf16>
    %cst_23 = arith.constant dense<0.000000e+00> : vector<64x128xf32>
    %45 = tpu.matmul %34, %44, %cst_23 {dimension_numbers = #tpu.dot_dimension_numbers<[1], [0], [0], [1], [0, 0, 1, 1], [], []>} : vector<64x384xbf16>, vector<384x128xbf16>, vector<64x128xf32> -> vector<64x128xf32>
    %46 = arith.addf %42, %45 : vector<64x128xf32>
    %c2 = arith.constant 2 : index
    %c0_24 = arith.constant 0 : index
    %c0_25 = arith.constant 0 : index
    %47 = vector.load %arg6[%c2, %c0_24, %c0_25] : memref<3x384x128xbf16, #tpu.memory_space<vmem>>, vector<1x384x128xbf16>
    %48 = vector.shape_cast %47 : vector<1x384x128xbf16> to vector<384x128xbf16>
    %cst_26 = arith.constant dense<0.000000e+00> : vector<64x128xf32>
    %49 = tpu.matmul %39, %48, %cst_26 {dimension_numbers = #tpu.dot_dimension_numbers<[1], [0], [0], [1], [0, 0, 1, 1], [], []>} : vector<64x384xbf16>, vector<384x128xbf16>, vector<64x128xf32> -> vector<64x128xf32>
    %50 = arith.addf %46, %49 : vector<64x128xf32>
    %c0_27 = arith.constant 0 : index
    %c0_28 = arith.constant 0 : index
    %51 = vector.load %arg7[%c0_27, %c0_28] : memref<1x128xf32, #tpu.memory_space<vmem>>, vector<1x128xf32>
    %52 = vector.broadcast %51 : vector<1x128xf32> to vector<64x128xf32>
    %53 = arith.mulf %50, %52 : vector<64x128xf32>
    %c0_29 = arith.constant 0 : index
    %c0_30 = arith.constant 0 : index
    %54 = vector.load %arg8[%c0_29, %c0_30] : memref<1x128xf32, #tpu.memory_space<vmem>>, vector<1x128xf32>
    %55 = vector.broadcast %54 : vector<1x128xf32> to vector<64x128xf32>
    %56 = arith.addf %53, %55 : vector<64x128xf32>
    %cst_31 = arith.constant 0.000000e+00 : f32
    %57 = vector.broadcast %cst_31 : f32 to vector<64x128xf32>
    %58 = arith.maximumf %56, %57 : vector<64x128xf32>
    %59 = arith.truncf %58 : vector<64x128xf32> to vector<64x128xbf16>
    %c0_32 = arith.constant 0 : index
    %c0_33 = arith.constant 0 : index
    %60 = vector.load %arg9[%c0_32, %c0_33] : memref<128x128xbf16, #tpu.memory_space<vmem>>, vector<128x128xbf16>
    %cst_34 = arith.constant dense<0.000000e+00> : vector<64x128xf32>
    %61 = tpu.matmul %59, %60, %cst_34 {dimension_numbers = #tpu.dot_dimension_numbers<[1], [0], [0], [1], [0, 0, 1, 1], [], []>} : vector<64x128xbf16>, vector<128x128xbf16>, vector<64x128xf32> -> vector<64x128xf32>
    %c0_35 = arith.constant 0 : index
    %c0_36 = arith.constant 0 : index
    %62 = vector.load %arg10[%c0_35, %c0_36] : memref<1x128xf32, #tpu.memory_space<vmem>>, vector<1x128xf32>
    %63 = vector.broadcast %62 : vector<1x128xf32> to vector<64x128xf32>
    %64 = arith.mulf %61, %63 : vector<64x128xf32>
    %c0_37 = arith.constant 0 : index
    %c0_38 = arith.constant 0 : index
    %65 = vector.load %arg11[%c0_37, %c0_38] : memref<1x128xf32, #tpu.memory_space<vmem>>, vector<1x128xf32>
    %66 = vector.broadcast %65 : vector<1x128xf32> to vector<64x128xf32>
    %67 = arith.addf %64, %66 : vector<64x128xf32>
    %68 = arith.extf %1 : vector<64x128xbf16> to vector<64x128xf32>
    %69 = arith.addf %67, %68 : vector<64x128xf32>
    %cst_39 = arith.constant 0.000000e+00 : f32
    %70 = vector.broadcast %cst_39 : f32 to vector<64x128xf32>
    %71 = arith.maximumf %69, %70 : vector<64x128xf32>
    %72 = arith.truncf %71 : vector<64x128xf32> to vector<64x128xbf16>
    %c0_40 = arith.constant 0 : index
    %c0_41 = arith.constant 0 : index
    %c0_42 = arith.constant 0 : index
    %73 = vector.load %arg12[%c0_40, %c0_41, %c0_42] : memref<1x64x128xbf16, #tpu.memory_space<vmem>>, vector<1x64x128xbf16>
    %74 = vector.shape_cast %73 : vector<1x64x128xbf16> to vector<64x128xbf16>
    %75 = vector.shape_cast %72 : vector<64x128xbf16> to vector<1x64x128xbf16>
    tpu.vector_store %arg12[%c0_40, %c0_41, %c0_42], %75 {strides = array<i32>} : memref<1x64x128xbf16, #tpu.memory_space<vmem>>, vector<1x64x128xbf16>,
    return
  }
  func.func @transform_0(%arg0: i32) -> (i32, i32, i32) {
    %c0_i32 = arith.constant 0 : i32
    %c0_i32_0 = arith.constant 0 : i32
    %c0_i32_1 = arith.constant 0 : i32
    return %arg0, %c0_i32, %c0_i32_0 : i32, i32, i32
  }
  func.func @transform_1(%arg0: i32) -> (i32, i32) {
    %c0_i32 = arith.constant 0 : i32
    %c0_i32_0 = arith.constant 0 : i32
    %c0_i32_1 = arith.constant 0 : i32
    return %c0_i32, %c0_i32_0 : i32, i32
  }
  func.func @transform_2(%arg0: i32) -> (i32, i32) {
    %c0_i32 = arith.constant 0 : i32
    %c0_i32_0 = arith.constant 0 : i32
    %c0_i32_1 = arith.constant 0 : i32
    return %c0_i32, %c0_i32_0 : i32, i32
  }
  func.func @transform_3(%arg0: i32) -> (i32, i32) {
    %c0_i32 = arith.constant 0 : i32
    %c0_i32_0 = arith.constant 0 : i32
    %c0_i32_1 = arith.constant 0 : i32
    return %c0_i32, %c0_i32_0 : i32, i32
  }
  func.func @transform_4(%arg0: i32) -> (i32, i32) {
    %c0_i32 = arith.constant 0 : i32
    %c0_i32_0 = arith.constant 0 : i32
    %c0_i32_1 = arith.constant 0 : i32
    return %c0_i32, %c0_i32_0 : i32, i32
  }
  func.func @transform_5(%arg0: i32) -> (i32, i32, i32) {
    %c0_i32 = arith.constant 0 : i32
    %c0_i32_0 = arith.constant 0 : i32
    %c0_i32_1 = arith.constant 0 : i32
    %c0_i32_2 = arith.constant 0 : i32
    return %c0_i32, %c0_i32_0, %c0_i32_1 : i32, i32, i32
  }
  func.func @transform_6(%arg0: i32) -> (i32, i32) {
    %c0_i32 = arith.constant 0 : i32
    %c0_i32_0 = arith.constant 0 : i32
    %c0_i32_1 = arith.constant 0 : i32
    return %c0_i32, %c0_i32_0 : i32, i32
  }
  func.func @transform_7(%arg0: i32) -> (i32, i32) {
    %c0_i32 = arith.constant 0 : i32
    %c0_i32_0 = arith.constant 0 : i32
    %c0_i32_1 = arith.constant 0 : i32
    return %c0_i32, %c0_i32_0 : i32, i32
  }
  func.func @transform_8(%arg0: i32) -> (i32, i32) {
    %c0_i32 = arith.constant 0 : i32
    %c0_i32_0 = arith.constant 0 : i32
    %c0_i32_1 = arith.constant 0 : i32
    return %c0_i32, %c0_i32_0 : i32, i32
  }
  func.func @transform_9(%arg0: i32) -> (i32, i32) {
    %c0_i32 = arith.constant 0 : i32
    %c0_i32_0 = arith.constant 0 : i32
    %c0_i32_1 = arith.constant 0 : i32
    return %c0_i32, %c0_i32_0 : i32, i32
  }
  func.func @transform_10(%arg0: i32) -> (i32, i32) {
    %c0_i32 = arith.constant 0 : i32
    %c0_i32_0 = arith.constant 0 : i32
    %c0_i32_1 = arith.constant 0 : i32
    return %c0_i32, %c0_i32_0 : i32, i32
  }
  func.func @transform_11(%arg0: i32) -> (i32, i32, i32) {
    %c0_i32 = arith.constant 0 : i32
    %c0_i32_0 = arith.constant 0 : i32
    %c0_i32_1 = arith.constant 0 : i32
    return %arg0, %c0_i32, %c0_i32_0 : i32, i32, i32
  }
}

</mosaic_0001>

<bundles_post_ra>
// kernel: tpu_custom_call.1
= control target key start
LH: loop header
LB: loop body
LE: loop exit
PB: predicated region body
PF: predicated region fallthrough
CT: control target
= control target key end

     0   :  { %s3605_s0 = inlined_call_operand.vmem [shape: bf16[2,64,128], index: 0, kind: input, shape index: {}]   ;;  %s3606_s1 = inlined_call_operand.vmem [shape: f32[64,1], index: 1, kind: input, shape index: {}]   ;;  %s3607_s2 = inlined_call_operand.hbm [shape: bf16[128,128], index: 2, kind: input, shape index: {}]   ;;  %s3608_s3 = inlined_call_operand.vmem [shape: f32[1,128], index: 3, kind: input, shape index: {}]   ;;  %s3609_s4 = inlined_call_operand.vmem [shape: f32[1,128], index: 4, kind: input, shape index: {}]   ;;  %s3610_s5 = inlined_call_operand.hbm [shape: bf16[3,384,128], index: 5, kind: input, shape index: {}]   ;;  %s3611_s6 = inlined_call_operand.vmem [shape: f32[1,128], index: 6, kind: input, shape index: {}]   ;;  %s3612_s7 = inlined_call_operand.vmem [shape: f32[1,128], index: 7, kind: input, shape index: {}]   ;;  %s3613_s8 = inlined_call_operand.hbm [shape: bf16[128,128], index: 8, kind: input, shape index: {}]   ;;  %s3614_s9 = inlined_call_operand.vmem [shape: f32[1,128], index: 9, kind: input, shape index: {}]   ;;  %s3615_s10 = inlined_call_operand.vmem [shape: f32[1,128], index: 10, kind: input, shape index: {}]   ;;  %s3616_s11 = inlined_call_operand.hbm [shape: bf16[2,64,128], index: 11, kind: output, shape index: {}]  }
   0x1   :  { %3627 = sst [smem:[#allocation18_spill]] %s3616_s11 }
   0x2   :  { %16 = vsyncpa [#allocation3], 0 }
   0x3   :  { %17 = vsyncpa [#allocation6], 0 }
   0x4   :  { %18 = vsyncpa [#allocation4], 0 }
   0x5   :  { %20 = vsyncpa [#allocation4 + $0x1], 0  ;;  %s3140_s17 = smov 0   ;;  %s3142_s18 = smov 0  }
   0x6   :  { %s3144_s19 = smov 0   ;;  %s3146_s20 = smov 0  }
   0x7 LB: > { %3628 = sst [smem:[#allocation12_spill]] %s3056_s17  ;;  %s3161_s21 = sadd.s32 4294967295, %s3068_s20   ;;  %s3068_s20 = sphi %s3146_s20, %s3657_s20   ;;  %s3064_s19 = sphi %s3144_s19, %s3662_s19   ;;  %s3060_s18 = sphi %s3142_s18, %s3661_s18   ;;  %s3056_s17 = sphi %s3140_s17, %s3660_s17  }
   0x8   : > { %3629 = sst [smem:[#allocation13_spill]] %s3064_s19  ;;  %s2214_s22 = sadd.s32 4294967294, %s3068_s20  }
   0x9   : > { %3630 = sst [smem:[#allocation14_spill]] %s3068_s20  ;;  %s3165_s23 = sadd.s32 1, %s3068_s20  }
   0xa   : > { %3631 = sst [smem:[#allocation15_spill]] %s3165_s23  ;;  %s269_s24 = sadd.s32 1, %s3064_s19 }
   0xb   : > { %s266_s25 = ssub.s32 %s3068_s20, %s3165_s23  ;;  %p279_p0 = scmp.ne.s32.totalorder %s3064_s19, %s3060_s18 }
   0xc   : > { %p267_p1 = scmp.eq.s32.totalorder %s266_s25, 0  ;;  %p280_p2 = scmp.eq.s32.totalorder %s3161_s21, 1 }
   0xd   : > { %p285_p3 = scmp.ne.s32.totalorder %s3060_s18, %s3056_s17  ;;  %p286_p4 = scmp.eq.s32.totalorder %s2214_s22, 1 }
   0xe   : > { %s3176_s26 = scalar_select %p267_p1, %s3064_s19, %s269_s24  }
   0xf   : > { %p3178_p5 = por %p280_p2, %p279_p0  ;;  %p3182_p6 = por %p286_p4, %p285_p3 }
  0x10   : > { %3632 = sst [smem:[#allocation16_spill]] %s3176_s26  ;;  %p2215_p7 = scmp.ge.s32.totalorder %s3068_s20, 1 }
  0x11   : > { %s3633_s27 = scalar_select %p3178_p5, 1, 0 }
  0x12   : > { %s3634_s28 = scalar_select %p3182_p6, 1, 0 }
  0x13   : > { %p293_p8 = scmp.lt.s32.totalorder %s3068_s20, 3  ;;  %p3620_p9 = scmp.eq.s32.totalorder %s3161_s21, 0 }
  0x14   : > { %3635 = sst [smem:[#allocation17_spill]] %s3634_s28  ;;  %s3070_s30 = smov [#allocation5]  }
  0x15   : > { %p3189_p10 = pnand %p2215_p7, %p293_p8  ;;  %s327_s12 = sshll.u32 %s3070_s30, 4  ;;  %s3195_s12 = int_to_ptr.vmem [resolvable:$true] %s327_s12 }
  0x16   : > { %s3071_s14 = smov [#allocation2]   ;;  %s3072_s16 = smov [#allocation7]  }
  0x17   : > { %s3636_s29 = scalar_select %p3189_p10, 1, 0 }
  0x18   : > { %p2750_p11 = pneg %p3189_p10  ;;  %s308_s15 = sshll.u32 %s3071_s14, 4  ;;  %s3203_s15 = int_to_ptr.vmem [resolvable:$true] %s308_s15 }
  0x19   : > { %s3205_s22 = sshll.u32 %s3072_s16, 4  ;;  %s2914_s26 = scalar_lea.hbm %s3610_s5, 9216  ;;  %s347_s22 = int_to_ptr.vmem [resolvable:$true] %s3205_s22 }
  0x1a   : > { %p3199_p12 = pnand %p3620_p9, %p2750_p11  ;;  %p2915_p13 = scmp.ne.s32.totalorder %s3610_s5, %s2914_s26 }
  0x1b   : > { %p2921_p3 = scmp.lt.u32.totalorder %s2914_s26, %s3610_s5 }
  0x1c   : > { %p3215_p0 = pneg %p3199_p12 }
  0x1e   : > { %p2917_p1 = pnand %p3215_p0, %p2915_p13 }
  0x20   : > { %p2918_p2 = pneg %p2917_p1 }
  0x22   : > { %p2923_p4 = pnand %p2921_p3, %p2918_p2 }
  0x24   : > { %2926 = shalt.err (!%p2923_p4)
}
  0x25   : > { %s2927_s19 = scalar_lea.vmem %s3195_s12, 9216  ;;  %p2935_p9 = scmp.lt.s32.totalorder %s3195_s12, %s3195_s12 }
  0x26   : > { %p2928_p7 = scmp.ne.s32.totalorder %s3195_s12, %s2927_s19  ;;  %p2936_p6 = scmp.lt.s32.totalorder %s2927_s19, %s2927_s19 }
  0x28   : > { %p2930_p8 = pnand %p2928_p7, %p3215_p0  ;;  %p2937_p13 = por %p2936_p6, %p2935_p9 }
  0x2a   : > { %p2931_p11 = pneg %p2930_p8 }
  0x2c   : > { %p2938_p1 = pnand %p2937_p13, %p2931_p11 }
  0x2e   : > { %2941 = shalt.err (!%p2938_p1)
}
  0x2f   : > { %s3073_s24 = smov 64   ;;  %s3074_s26 = smov 4  }
  0x30   : > { %2756 = dma.hbm_to_vmem [thread:$0]  (!%p3199_p12), %s3610_s5, 9216, %s3195_s12, [#allocation6], %s3073_s24, %s3073_s24, %s3074_s26  }
  0x31   : > { %s2942_s19 = scalar_lea.hbm %s3607_s2, 1024 }
  0x32   : > { %p2943_p6 = scmp.ne.s32.totalorder %s3607_s2, %s2942_s19  ;;  %p2949_p3 = scmp.lt.u32.totalorder %s2942_s19, %s3607_s2 }
  0x34   : > { %p2945_p9 = pnand %p2943_p6, %p3215_p0 }
  0x36   : > { %p2946_p2 = pneg %p2945_p9 }
  0x38   : > { %p2951_p4 = pnand %p2949_p3, %p2946_p2 }
  0x3a   : > { %2954 = shalt.err (!%p2951_p4)
}
  0x3b   : > { %s2955_s12 = scalar_lea.vmem %s3203_s15, 1024  ;;  %p2963_p13 = scmp.lt.s32.totalorder %s3203_s15, %s3203_s15 }
  0x3c   : > { %p2956_p7 = scmp.ne.s32.totalorder %s3203_s15, %s2955_s12  ;;  %p2964_p1 = scmp.lt.s32.totalorder %s2955_s12, %s2955_s12 }
  0x3e   : > { %p2958_p8 = pnand %p2956_p7, %p3215_p0  ;;  %p2965_p6 = por %p2964_p1, %p2963_p13 }
  0x40   : > { %p2959_p11 = pneg %p2958_p8 }
  0x42   : > { %p2966_p9 = pnand %p2965_p6, %p2959_p11 }
  0x44   : > { %2969 = shalt.err (!%p2966_p9)
}
  0x45   : > { %2753 = dma.hbm_to_vmem [thread:$0]  (!%p3199_p12), %s3607_s2, 1024, %s3203_s15, [#allocation3], %s3073_s24, %s3073_s24, %s3074_s26  }
  0x46   : > { %s2970_s25 = scalar_lea.hbm %s3613_s8, 1024 }
  0x47   : > { %p2971_p2 = scmp.ne.s32.totalorder %s3613_s8, %s2970_s25  ;;  %p2977_p7 = scmp.lt.u32.totalorder %s2970_s25, %s3613_s8 }
  0x49   : > { %p2973_p3 = pnand %p2971_p2, %p3215_p0 }
  0x4b   : > { %p2974_p4 = pneg %p2973_p3 }
  0x4d   : > { %p2979_p8 = pnand %p2977_p7, %p2974_p4 }
  0x4f   : > { %2982 = shalt.err (!%p2979_p8)
}
  0x50   : > { %s2983_s12 = scalar_lea.vmem %s347_s22, 1024  ;;  %p2991_p6 = scmp.lt.s32.totalorder %s347_s22, %s347_s22 }
  0x51   : > { %p2984_p11 = scmp.ne.s32.totalorder %s347_s22, %s2983_s12  ;;  %p2992_p9 = scmp.lt.s32.totalorder %s2983_s12, %s2983_s12 }
  0x53   : > { %p2986_p13 = pnand %p2984_p11, %p3215_p0  ;;  %p2993_p5 = por %p2992_p9, %p2991_p6 }
  0x55   : > { %p2987_p1 = pneg %p2986_p13 }
  0x57   : > { %p2994_p10 = pnand %p2993_p5, %p2987_p1 }
  0x59   : > { %2997 = shalt.err (!%p2994_p10)
}
  0x5a   : > { %2759 = dma.hbm_to_vmem [thread:$0]  (!%p3199_p12), %s3613_s8, 1024, %s347_s22, [#allocation6], %s3073_s24, %s3073_s24, %s3074_s26  }
  0x5b   : > { %p3639_p2 = scmp.ne.s32.totalorder %s3636_s29, 0 }
  0x5c   : > { %p3640_p0 = scmp.eq.s32.totalorder (!%p3639_p2), %s3161_s21, 0 }
  0x5d   : > { %376 = sbr.rel (%p3639_p2) target bundleno = 927 (0x39f), region = 64 }
  0x64   : > { %3043 = dma.done.wait (%p3640_p0), [#allocation3], 1024   ;;  %p3641_p3 = pmov %p3640_p0 }
  0x65   : > { %p3642_p5 = pmov %p3640_p0 }
  0x66   : > { %3045 = vsyncadd (%p3641_p3), [#allocation3], 4294966272 }
  0x67   : > { %3047 = dma.done.wait (%p3642_p5), [#allocation6], 10240   ;;  %p3643_p10 = pmov %p3640_p0 }
  0x68   : > { %p424_p4 = scmp.lt.s32.totalorder %s3161_s21, 1  ;;  %v3075_v0 = vmov 0   ;;  %v2814_v1 = vld [vmem:[#allocation2] sm:$0xff]   ;;  %v2815_v2 = vld [vmem:[#allocation2 + $0x8] sm:$0xff]   ;;  %v2816_v3 = vld [vmem:[#allocation2 + $0x10] sm:$0xff]   ;;  %v3076_v13 = vmov 0.0  }
  0x69   : > { %3049 = vsyncadd (%p3643_p10), [#allocation6], 4294957056  ;;  %2812 = vset.pattern.permute.xlu0 %v3075_v0  ;;  %2813 = vset.pattern.permute.xlu1 %v3075_v0  ;;  %v2817_v4 = vld [vmem:[#allocation2 + $0x18] sm:$0xff]   ;;  %v633_v6 = vld [vmem:[%s3606_s1] sm:$0xff]  ;;  %s2372_s22 = sshll.u32 %s3161_s21, 9  ;;  %s3650_s20 = sld [smem:[#allocation18_spill]] }
  0x6a   : > { %s425_s23 = scalar_select %p424_p4, %s3161_s21, 1  ;;  %2576 = vmatprep.subr.bf16.mxu0 %v2814_v1  ;;  %v634_v7 = vld [vmem:[%s3606_s1 + $0x8] sm:$0xff]  ;;  %v635_v8 = vld [vmem:[%s3606_s1 + $0x10] sm:$0xff]  ;;  %v636_v9 = vld [vmem:[%s3606_s1 + $0x18] sm:$0xff]  ;;  %vm641_vm0 = vcmp.gt.f32.partialorder %v633_v6, 0.5  ;;  %vm669_vm2 = vcmp.lt.f32.partialorder %v633_v6, 6.5 }
  0x6b   : > { %2577 = vmatpush3.bf16.msra.mxu0 %v2814_v1  ;;  %v2818_v10 = vld [vmem:[#allocation2 + $0x20] sm:$0xff]   ;;  %vm642_vm1 = vcmp.gt.f32.partialorder %v634_v7, 0.5  ;;  %v638_v12 = vld [vmem:[%s3606_s1 + $0x28] sm:$0xff]  ;;  %v2241_v14 = vsel %vm641_vm0, 1.0, %v3076_v13  ;;  %vm643_vm3 = vcmp.gt.f32.partialorder %v635_v8, 0.5  ;;  %vm644_vm4 = vcmp.gt.f32.partialorder %v636_v9, 0.5 }
  0x6c   : > { %s2363_s29 = sshll.u32 %s425_s23, 5  ;;  %2578 = vmatprep.subr.bf16.mxu0 %v2815_v2  ;;  %v637_v11 = vld [vmem:[%s3606_s1 + $0x20] sm:$0xff]  ;;  %v2242_v15 = vsel %vm642_vm1, 1.0, %v3076_v13  ;;  %v2819_v16 = vld [vmem:[#allocation2 + $0x28] sm:$0xff]   ;;  %v2243_v18 = vsel %vm643_vm3, 1.0, %v3076_v13  ;;  %v2244_v19 = vsel %vm644_vm4, 1.0, %v3076_v13 }
  0x6d   : > { %s3302_s24 = scalar_lea.vmem %s3605_s0, %s2363_s29  ;;  %v665_v17 = vpack.c.bf16 %v2242_v15, %v2241_v14  ;;  %vm645_vm5 = vcmp.gt.f32.partialorder %v637_v11, 0.5  ;;  %v639_v20 = vld [vmem:[%s3606_s1 + $0x30] sm:$0xff]  ;;  %v640_v21 = vld [vmem:[%s3606_s1 + $0x38] sm:$0xff]  ;;  %v2826_v22 = vld [vmem:[#allocation5 + $0x100] sm:$0xff]   ;;  %vm670_vm6 = vcmp.lt.f32.partialorder %v634_v7, 6.5  ;;  %v666_v23 = vpack.c.bf16 %v2244_v19, %v2243_v18  ;;  %s421_s23 = sand.u32 1, %s3060_s18  }
  0x6e   : > { %v430_v5 = vld [vmem:[%s3302_s24] sm:$0xff]   ;;  %vm646_vm7 = vcmp.gt.f32.partialorder %v638_v12, 0.5  ;;  %v2245_v24 = vsel %vm645_vm5, 1.0, %v3076_v13  ;;  %vm673_vm8 = vcmp.lt.f32.partialorder %v637_v11, 6.5  ;;  %vm671_vm9 = vcmp.lt.f32.partialorder %v635_v8, 6.5  ;;  %2408 = vmatprep.subr.bf16.mxu1 %v2826_v22  ;;  %v2828_v31 = vld [vmem:[#allocation5 + $0x108] sm:$0xff]  }
  0x6f   : > { %2579 = vmatpush3.bf16.msra.mxu0 %v2815_v2  ;;  %2592 = vmatprep.mubr.bf16.mxu0 %v430_v5  ;;  %v2827_v25 = vld [vmem:[#allocation5 + $0xc0] sm:$0xff]   ;;  %v2246_v26 = vsel %vm646_vm7, 1.0, %v3076_v13  ;;  %vm672_vm10 = vcmp.lt.f32.partialorder %v636_v9, 6.5  ;;  %v2251_v28 = vsel %vm671_vm9, 1.0, %v3076_v13  ;;  %v2249_v30 = vsel %vm669_vm2, 1.0, %v3076_v13  ;;  %v2829_v33 = vld [vmem:[#allocation5 + $0xc8] sm:$0xff]   ;;  %s3651_s28 = smov %s3650_s20  ;;  %s3558_s25 = scalar_lea.hbm %s3650_s20, %s2372_s22 }
  0x70   : > { %2580 = vmatprep.subr.bf16.mxu0 %v2816_v3  ;;  %738 = vperm.xlu0 %2812, %v665_v17   ;;  %v667_v27 = vpack.c.bf16 %v2246_v26, %v2245_v24  ;;  %v2252_v29 = vsel %vm672_vm10, 1.0, %v3076_v13  ;;  %vm674_vm11 = vcmp.lt.f32.partialorder %v638_v12, 6.5  ;;  %v2250_v32 = vsel %vm670_vm6, 1.0, %v3076_v13  ;;  %v2820_v35 = vld [vmem:[#allocation2 + $0x30] sm:$0xff]   ;;  %v2821_v42 = vld [vmem:[#allocation2 + $0x38] sm:$0xff]   ;;  %v432_v48 = vld [vmem:[%s3302_s24 + $0x8] sm:$0xff]  }
  0x71   : > { %2409 = vmatpush3.bf16.msra.mxu1 %v2827_v25  ;;  %v693_v34 = vpack.c.bf16 %v2250_v32, %v2249_v30  ;;  %vm647_vm12 = vcmp.gt.f32.partialorder %v639_v20, 0.5  ;;  %vm648_vm13 = vcmp.gt.f32.partialorder %v640_v21, 0.5  ;;  %v694_v36 = vpack.c.bf16 %v2252_v29, %v2251_v28  ;;  %v2831_v41 = vld [vmem:[#allocation5 + $0x110] sm:$0xff]   ;;  %v2830_v50 = vld [vmem:[#allocation5 + $0x140] sm:$0xff]   ;;  %v2833_v52 = vld [vmem:[#allocation5 + $0x148] sm:$0xff]   ;;  %s2224_s29 = sshll.u32 %s421_s23, 5 }
  0x72   : > { %748 = vperm.xlu1 %2813, %v667_v27   ;;  %v2253_v37 = vsel %vm673_vm8, 1.0, %v3076_v13  ;;  %v2247_v38 = vsel %vm647_vm12, 1.0, %v3076_v13  ;;  %v2248_v39 = vsel %vm648_vm13, 1.0, %v3076_v13  ;;  %v2254_v40 = vsel %vm674_vm11, 1.0, %v3076_v13  ;;  %2410 = vmatprep.subr.bf16.mxu1 %v2828_v31  ;;  %v2832_v44 = vld [vmem:[#allocation5 + $0xd0] sm:$0xff]   ;;  %v436_v53 = vld [vmem:[%s3302_s24 + $0x18] sm:$0xff]  }
  0x73   : > { %2581 = vmatpush3.bf16.msra.mxu0 %v2816_v3  ;;  %vm675_vm14 = vcmp.lt.f32.partialorder %v639_v20, 6.5  ;;  %vm676_vm15 = vcmp.lt.f32.partialorder %v640_v21, 6.5  ;;  %v668_v43 = vpack.c.bf16 %v2248_v39, %v2247_v38  ;;  %v695_v45 = vpack.c.bf16 %v2254_v40, %v2253_v37  ;;  %v434_v49 = vld [vmem:[%s3302_s24 + $0x10] sm:$0xff]   ;;  %v2834_v54 = vld [vmem:[#allocation5 + $0x118] sm:$0xff]   ;;  %v2837_v57 = vld [vmem:[#allocation5 + $0x120] sm:$0xff]   ;;  %s3545_s13 = scalar_lea.vmem [#allocation8], %s2224_s29 }
  0x74   : > { %2582 = vmatprep.subr.bf16.mxu0 %v2817_v4  ;;  %743 = vperm.xlu0 %2812, %v666_v23   ;;  %v2255_v46 = vsel %vm675_vm14, 1.0, %v3076_v13  ;;  %v2256_v47 = vsel %vm676_vm15, 1.0, %v3076_v13  ;;  %v2835_v55 = vld [vmem:[#allocation5 + $0xd8] sm:$0xff]   ;;  %v2836_v56 = vld [vmem:[#allocation5 + $0x150] sm:$0xff]   ;;  %v2838_v58 = vld [vmem:[#allocation5 + $0xe0] sm:$0xff]   ;;  %vm733_vm1 = vcmask 1040384  }
  0x75   : > { %2411 = vmatpush3.bf16.msra.mxu1 %v2829_v33  ;;  %v696_v51 = vpack.c.bf16 %v2256_v47, %v2255_v46  ;;  %v2839_v59 = vld [vmem:[#allocation5 + $0x158] sm:$0xff]   ;;  %v2840_v60 = vld [vmem:[#allocation5 + $0x128] sm:$0xff]   ;;  %v2842_v62 = vld [vmem:[#allocation5 + $0x160] sm:$0xff]   ;;  %vm697_vm0 = vsmask.f32 256  ;;  %vm776_vm4 = vcmask 1047552  }
  0x76   : > { %781 = vperm.xlu1 %2813, %v693_v34   ;;  %2412 = vmatprep.subr.bf16.mxu1 %v2831_v41  ;;  %v2841_v61 = vld [vmem:[#allocation5 + $0xe8] sm:$0xff]   ;;  %v2843_v63 = vld [vmem:[#allocation5 + $0x130] sm:$0xff]   ;;  %v2846_v2 = vld [vmem:[#allocation5 + $0x138] sm:$0xff]   ;;  %vm760_vm2 = vsmask.f32 7424  ;;  %vm815_vm5 = vcmask 1043456  }
  0x77   : > { %2583 = vmatpush3.bf16.msra.mxu0 %v2817_v4  ;;  %v2844_v0 = vld [vmem:[#allocation5 + $0xf0] sm:$0xff]   ;;  %v2845_v1 = vld [vmem:[#allocation5 + $0x168] sm:$0xff]   ;;  %v2847_v3 = vld [vmem:[#allocation5 + $0xf8] sm:$0xff]   ;;  %s3564_s30 = scalar_lea.sflag [#allocation4], %s421_s23  ;;  %p3652_p7 = scmp.ne.s32.totalorder %s3633_s27, 0 }
  0x78   : > { %2584 = vmatprep.subr.bf16.mxu0 %v2818_v10  ;;  %786 = vperm.xlu0 %2812, %v694_v36   ;;  %v2848_v4 = vld [vmem:[#allocation5 + $0x170] sm:$0xff]   ;;  %v2849_v5 = vld [vmem:[#allocation5 + $0x40] sm:$0xff]   ;;  %v2851_v6 = vld [vmem:[#allocation5 + $0x178] sm:$0xff]   ;;  %s3077_s14 = smov [#allocation8]  }
  0x79   : > { %2413 = vmatpush3.bf16.msra.mxu1 %v2832_v44  ;;  %v3336_v7 = vld [vmem:[#allocation5 + $0x80] sm:$0xff]   ;;  %vm3360_vm3 = vmand %vm733_vm1, %vm697_vm0  ;;  %s3002_s16 = sshll.u32 %s3077_s14, 4  ;;  %s3003_s16 = int_to_ptr.vmem [resolvable:$false] %s3002_s16 }
  0x7a   : > { %753 = vperm.xlu1 %2813, %v668_v43   ;;  %2414 = vmatprep.subr.bf16.mxu1 %v2834_v54  ;;  %v2239_v8 = vld [vmem:[%s3608_s3] ss:$0 sm:$0xff]  ;;  %vm3397_vm6 = vmand %vm776_vm4, %vm760_vm2  ;;  %s3004_s19 = scalar_lea.vmem %s3003_s16, 1024 }
  0x7b   : > { %2585 = vmatpush3.bf16.msra.mxu0 %v2818_v10  ;;  %v2240_v10 = vld [vmem:[%s3609_s4] ss:$0 sm:$0xff]  ;;  %vm3458_vm7 = vmneg %vm815_vm5 }
  0x7c   : > { %2586 = vmatprep.subr.bf16.mxu0 %v2819_v16  ;;  %791 = vperm.xlu0 %2812, %v695_v45  }
  0x7d   : > { %2415 = vmatpush3.bf16.msra.mxu1 %v2835_v55 }
  0x7e   : > { %796 = vperm.xlu1 %2813, %v696_v51   ;;  %2416 = vmatprep.subr.bf16.mxu1 %v2837_v57 }
  0x7f   : > { %2587 = vmatpush3.bf16.msra.mxu0 %v2819_v16 }
  0x80   : > { %2588 = vmatprep.subr.bf16.mxu0 %v2820_v35 }
  0x81   : > { %2417 = vmatpush3.bf16.msra.mxu1 %v2838_v58 }
  0x82   : > { %2418 = vmatprep.subr.bf16.mxu1 %v2840_v60 }
  0x83   : > { %2589 = vmatpush3.bf16.msra.mxu0 %v2820_v35 }
  0x84   : > { %2590 = vmatprep.subr.bf16.mxu0 %v2821_v42 }
  0x85   : > { %2419 = vmatpush3.bf16.msra.mxu1 %v2841_v61 }
  0x86   : > { %2420 = vmatprep.subr.bf16.mxu1 %v2843_v63 }
  0x87   : > { %2591 = vmatpush3.bf16.msra.mxu0 %v2821_v42 }
  0x88   : > { %2600 = vmatprep.subr.bf16.mxu0 %v2830_v50 }
  0x89   : > { %2421 = vmatpush3.bf16.msra.mxu1 %v2844_v0 }
  0x8a   : > { %2593 = vmatmul.mubr.bf16.vlgmr.msra.gmra.mrb[0].mxu0 %v432_v48  ;;  %2422 = vmatprep.subr.bf16.mxu1 %v2846_v2 }
  0x8b   : > { %2596 = vmatprep.mubr.bf16.mxu0 %v434_v49  ;;  %2601 = vmatpush3.bf16.msra.mxu0 %v2830_v50 }
  0x8c   : > { %2602 = vmatprep.subr.bf16.mxu0 %v2833_v52 }
  0x8d   : > { %2423 = vmatpush3.bf16.msra.mxu1 %v2847_v3 }
  0x8e   : > { %2460 = vmatprep.subr.bf16.mxu1 %v2849_v5  ;;  %v2850_v5 = vld [vmem:[#allocation5] sm:$0xff]  }
  0x8f   : > { %2603 = vmatpush3.bf16.msra.mxu0 %v2833_v52 }
  0x90   : > { %2604 = vmatprep.subr.bf16.mxu0 %v2836_v56 }
  0x92   : > { %2597 = vmatmul.mubr.bf16.gmra.mrb[4].mxu0 %v436_v53  ;;  %v2857_v53 = vld [vmem:[#allocation5 + $0x88] sm:$0xff]  }
  0x93   : > { %2605 = vmatpush3.bf16.msra.mxu0 %v2836_v56 }
  0x94   : > { %2606 = vmatprep.subr.bf16.mxu0 %v2839_v59 }
  0x97   : > { %2607 = vmatpush3.bf16.msra.mxu0 %v2839_v59 }
  0x98   : > { %2608 = vmatprep.subr.bf16.mxu0 %v2842_v62 }
  0x9b   : > { %2609 = vmatpush3.bf16.msra.mxu0 %v2842_v62 }
  0x9c   : > { %2610 = vmatprep.subr.bf16.mxu0 %v2845_v1 }
  0x9f   : > { %2611 = vmatpush3.bf16.msra.mxu0 %v2845_v1 }
  0xa0   : > { %2612 = vmatprep.subr.bf16.mxu0 %v2848_v4 }
  0xa3   : > { %2613 = vmatpush3.bf16.msra.mxu0 %v2848_v4 }
  0xa4   : > { %2614 = vmatprep.subr.bf16.mxu0 %v2851_v6 }
  0xa7   : > { %2615 = vmatpush3.bf16.msra.mxu0 %v2851_v6 }
  0xa8   : > { %2624 = vmatprep.subr.bf16.mxu0 %v3336_v7 }
  0xef   : > { %v739_v27 = vpop.permute.xlu0 %738 }
  0xf1   : > { %v3345_v21 = vpop.permute.xlu1 %748 }
  0xf3   : > { %v744_v51 = vpop.permute.xlu0 %743 }
  0xf5   : > { %v782_v40 = vpop.permute.xlu1 %781 }
  0xf9   : > { %v754_v0 = vpop.permute.xlu1 %753 }
 0x15d   : > { %v2594_v9 = vpop.f32.mrb[0].mxu0 }
 0x15e   : > { %v600_v11 = vmul.f32 %v2594_v9, %v2239_v8  ;;  %v560_v12 = vpop.f32.mrb[1].mxu0 }
 0x15f   : > { %v598_v13 = vmul.f32 %v2239_v8, %v560_v12  ;;  %v2595_v14 = vpop.f32.mrb[2].mxu0 }
 0x160   : > { %v615_v15 = vadd.f32 %v2240_v10, %v600_v11  ;;  %v601_v16 = vmul.f32 %v2595_v14, %v2239_v8  ;;  %v563_v17 = vpop.f32.mrb[3].mxu0  ;;  %v2852_v11 = vld [vmem:[#allocation5 + $0x48] sm:$0xff]  }
 0x161   : > { %v613_v18 = vadd.f32 %v2240_v10, %v598_v13  ;;  %v599_v19 = vmul.f32 %v2239_v8, %v563_v17 }
 0x162   : > { %v616_v20 = vadd.f32 %v2240_v10, %v601_v16  ;;  %v623_v23 = vmax.f32 %v615_v15, 0.0  ;;  %v787_v15 = vpop.permute.xlu0 %786 }
 0x163   : > { %v614_v22 = vadd.f32 %v2240_v10, %v599_v19  ;;  %v621_v25 = vmax.f32 %v613_v18, 0.0 }
 0x164   : > { %v624_v24 = vmax.f32 %v616_v20, 0.0 }
 0x165   : > { %v622_v26 = vmax.f32 %v614_v22, 0.0  ;;  %v2598_v28 = vpop.f32.mrb[4].mxu0 }
 0x166   : > { %v3347_v29 = vpack.c.bf16 %v624_v24, %v623_v23  ;;  %v604_v30 = vmul.f32 %v2598_v28, %v2239_v8  ;;  %v576_v31 = vpop.f32.mrb[5].mxu0  ;;  %v2853_v24 = vld [vmem:[#allocation5 + $0x8] sm:$0xff]  }
 0x167   : > { %v3349_v32 = vpack.c.bf16 %v622_v26, %v621_v25  ;;  %v602_v33 = vmul.f32 %v2239_v8, %v576_v31  ;;  %v2599_v34 = vpop.f32.mrb[6].mxu0  ;;  %v2880_v25 = vld [vmem:[#allocation5 + $0x190] sm:$0xff]  }
 0x168   : > { %v619_v35 = vadd.f32 %v2240_v10, %v604_v30  ;;  %v706_v36 = vshrl.u32 %v3347_v29, 16  ;;  %v709_v37 = vshll.u32 %v3347_v29, 16  ;;  %v605_v38 = vmul.f32 %v2599_v34, %v2239_v8  ;;  %v579_v39 = vpop.f32.mrb[7].mxu0  ;;  %v797_v30 = vpop.permute.xlu1 %796 }
 0x169   : > { %v699_v41 = vshrl.u32 %v3349_v32, 16  ;;  %v702_v42 = vshll.u32 %v3349_v32, 16  ;;  %v617_v43 = vadd.f32 %v2240_v10, %v602_v33  ;;  %v603_v44 = vmul.f32 %v2239_v8, %v579_v39  ;;  %1139 = vmatprep.mubr.bf16.mxu1 %v3349_v32  ;;  %v2855_v33 = vld [vmem:[#allocation5 + $0x50] sm:$0xff]  }
 0x16a   : > { %v627_v45 = vmax.f32 %v619_v35, 0.0  ;;  %v3356_v46 = vrot.slane %v706_v36, 7  ;;  %v620_v47 = vadd.f32 %v2240_v10, %v605_v38  ;;  %v763_v56 = vrot.slane %v709_v37, 1 }
 0x16b   : > { %v701_v48 = vrot.slane %v699_v41, 7  ;;  %v761_v49 = vrot.slane %v702_v42, 1  ;;  %v625_v50 = vmax.f32 %v617_v43, 0.0  ;;  %v618_v52 = vadd.f32 %v2240_v10, %v603_v44  ;;  %v792_v43 = vpop.permute.xlu0 %791 }
 0x16c   : > { %v711_v54 = vor.u32 %v709_v37, %v3356_v46  ;;  %v628_v55 = vmax.f32 %v620_v47, 0.0  ;;  %v817_v57 = vrot.slane %v3349_v32, 4  ;;  %v821_v61 = vrot.slane %v3347_v29, 4  ;;  %v2878_v32 = vld [vmem:[#allocation5 + $0x200] sm:$0xff]  }
 0x16d   : > { %v704_v58 = vor.u32 %v702_v42, %v701_v48  ;;  %v626_v59 = vmax.f32 %v618_v52, 0.0  ;;  %v762_v60 = vor.u32 %v761_v49, %v699_v41  ;;  %v765_v18 = vor.u32 %v763_v56, %v706_v36 }
 0x16e   : > { %v712_v62 = vsel %vm697_vm0, %v701_v48, %v711_v54  ;;  %v3368_v63 = vpack.c.bf16 %v628_v55, %v627_v45  ;;  %v3389_v16 = vsel %vm815_vm5, %v817_v57, %v821_v61  ;;  %v2856_v48 = vld [vmem:[#allocation5 + $0x10] sm:$0xff]   ;;  %v2858_v54 = vld [vmem:[#allocation5 + $0x58] sm:$0xff]  }
 0x16f   : > { %v735_v1 = vsel %vm3360_vm3, 0, %v704_v58  ;;  %v3372_v2 = vmul.bf16 %v744_v51, %v712_v62  ;;  %v3374_v3 = vpack.c.bf16 %v626_v59, %v625_v50  ;;  %v764_v4 = vsel %vm760_vm2, %v762_v60, %v763_v56  ;;  %v2859_v60 = vld [vmem:[#allocation5 + $0x18] sm:$0xff]  }
 0x170   : > { %v3377_v6 = vmul.bf16 %v739_v27, %v735_v1  ;;  %v3379_v8 = vmul.bf16 %v782_v40, %v764_v4  ;;  %v725_v9 = vshll.u32 %v3368_v63, 16  ;;  %v722_v10 = vshrl.u32 %v3368_v63, 16  ;;  %v2863_v4 = vld [vmem:[#allocation5 + $0x98] sm:$0xff]  }
 0x171   : > { %v819_v12 = vrot.slane %v3372_v2, 4  ;;  %v714_v13 = vshrl.u32 %v3374_v3, 16  ;;  %v717_v14 = vshll.u32 %v3374_v3, 16  ;;  %v827_v26 = vrot.slane %v3374_v3, 4 }
 0x172   : > { %v816_v17 = vrot.slane %v3377_v6, 4  ;;  %v769_v19 = vrot.slane %v725_v9, 1  ;;  %1140 = vmatmul.mubr.bf16.vlgmr.msra.gmra.mrb[0].mxu1 %v3377_v6  ;;  %2616 = vmatprep.mubr.bf16.mxu0 %v3379_v8  ;;  %v724_v20 = vrot.slane %v722_v10, 7  ;;  %v833_v27 = vrot.slane %v3368_v63, 4  ;;  %v2882_v6 = vld [vmem:[#allocation5 + $0x1d8] sm:$0xff]  }
 0x173   : > { %v716_v22 = vrot.slane %v714_v13, 7  ;;  %v766_v23 = vrot.slane %v717_v14, 1  ;;  %2461 = vmatpush3.bf16.msra.mxu1 %v2850_v5  ;;  %1147 = vmatprep.mubr.bf16.mxu1 %v3347_v29  ;;  %v3412_v37 = vsel %vm815_vm5, %v821_v61, %v827_v26  ;;  %v818_v51 = vrot.slane %v3379_v8, 4  ;;  %v2861_v61 = vld [vmem:[#allocation5 + $0x60] sm:$0xff]  }
 0x174   : > { %v727_v28 = vor.u32 %v725_v9, %v724_v20  ;;  %2462 = vmatprep.subr.bf16.mxu1 %v2852_v11  ;;  %v771_v31 = vor.u32 %v769_v19, %v722_v10  ;;  %v3408_v29 = vsel %vm815_vm5, %v816_v17, %v819_v12  ;;  %v3420_v41 = vsel %vm815_vm5, %v827_v26, %v833_v27  ;;  %v2862_v5 = vld [vmem:[#allocation5 + $0x20] sm:$0xff]   ;;  %v2865_v9 = vld [vmem:[#allocation5 + $0x28] sm:$0xff]   ;;  %v2867_v10 = vld [vmem:[#allocation5 + $0x70] sm:$0xff]  }
 0x175   : > { %v719_v34 = vor.u32 %v717_v14, %v716_v22  ;;  %v767_v35 = vsel %vm760_vm2, %v765_v18, %v766_v23  ;;  %v768_v36 = vor.u32 %v766_v23, %v714_v13  ;;  %v2866_v8 = vld [vmem:[#allocation5 + $0xa0] sm:$0xff]   ;;  %v2869_v11 = vld [vmem:[#allocation5 + $0xa8] sm:$0xff]   ;;  %v2870_v13 = vld [vmem:[#allocation5 + $0x78] sm:$0xff]  }
 0x176   : > { %v800_v38 = vmul.bf16 %v787_v15, %v767_v35  ;;  %v728_v39 = vsel %vm697_vm0, %v716_v22, %v727_v28  ;;  %v778_v40 = vsel %vm3397_vm6, %v771_v31, 0  ;;  %v2872_v14 = vld [vmem:[#allocation5 + $0xb0] sm:$0xff]   ;;  %v2871_v15 = vld [vmem:[#allocation5 + $0x38] sm:$0xff]   ;;  %v2873_v18 = vld [vmem:[#allocation5 + $0x1c0] sm:$0xff]  }
 0x177   : > { %v720_v42 = vsel %vm697_vm0, %v3356_v46, %v719_v34  ;;  %v770_v44 = vsel %vm760_vm2, %v768_v36, %v769_v19  ;;  %v3425_v45 = vmul.bf16 %v754_v0, %v728_v39  ;;  %2463 = vmatpush3.bf16.msra.mxu1 %v2853_v24  ;;  %v3427_v47 = vmul.bf16 %v797_v30, %v778_v40  ;;  %v2875_v19 = vld [vmem:[#allocation5 + $0xb8] sm:$0xff]   ;;  %v2874_v20 = vld [vmem:[#allocation5 + $0x180] sm:$0xff]   ;;  %v2876_v22 = vld [vmem:[#allocation5 + $0x1c8] sm:$0xff]  }
 0x178   : > { %v758_v49 = vmul.bf16 %v3345_v21, %v720_v42  ;;  %v823_v50 = vrot.slane %v800_v38, 4  ;;  %v801_v52 = vmul.bf16 %v792_v43, %v770_v44  ;;  %2617 = vmatmul.mubr.bf16.vlgmr.msra.gmra.mrb[8].mxu0 %v800_v38  ;;  %2464 = vmatprep.subr.bf16.mxu1 %v2855_v33  ;;  %v2860_v21 = vld [vmem:[#allocation5 + $0x90] sm:$0xff]   ;;  %v2881_v24 = vld [vmem:[#allocation5 + $0x208] sm:$0xff]   ;;  %v2883_v26 = vld [vmem:[#allocation5 + $0x198] sm:$0xff]  }
 0x179   : > { %v831_v46 = vrot.slane %v3425_v45, 4  ;;  %v835_v55 = vrot.slane %v3427_v47, 4  ;;  %2625 = vmatpush3.bf16.msra.mxu0 %v3336_v7  ;;  %v2879_v23 = vld [vmem:[#allocation5 + $0x1d0] sm:$0xff]   ;;  %v2885_v28 = vld [vmem:[#allocation5 + $0x1e0] sm:$0xff]   ;;  %v2887_v30 = vld [vmem:[#allocation5 + $0x218] sm:$0xff]  }
 0x17a   : > { %v825_v56 = vrot.slane %v758_v49, 4  ;;  %v829_v58 = vrot.slane %v801_v52, 4  ;;  %1148 = vmatmul.mubr.bf16.gmra.mrb[4].mxu1 %v3372_v2  ;;  %2620 = vmatprep.mubr.bf16.mxu0 %v801_v52  ;;  %v3436_v59 = vsel %vm815_vm5, %v818_v51, %v823_v50  ;;  %v2864_v2 = vld [vmem:[#allocation5 + $0x68] sm:$0xff]   ;;  %v2886_v31 = vld [vmem:[#allocation5 + $0x1a0] sm:$0xff]   ;;  %v2891_v36 = vld [vmem:[#allocation5 + $0x1f0] sm:$0xff]  }
 0x17b   : > { %2465 = vmatpush3.bf16.msra.mxu1 %v2856_v48  ;;  %1155 = vmatprep.mubr.bf16.mxu1 %v3374_v3  ;;  %v2888_v33 = vld [vmem:[#allocation5 + $0x1e8] sm:$0xff]   ;;  %v2890_v34 = vld [vmem:[#allocation5 + $0x220] sm:$0xff]   ;;  %v2892_v39 = vld [vmem:[#allocation5 + $0x1b0] sm:$0xff]  }
 0x17c   : > { %2626 = vmatprep.subr.bf16.mxu0 %v2857_v53  ;;  %2466 = vmatprep.subr.bf16.mxu1 %v2858_v54  ;;  %v3440_v62 = vsel %vm815_vm5, %v823_v50, %v829_v58  ;;  %v3445_v7 = vsel %vm815_vm5, %v829_v58, %v835_v55  ;;  %v3450_v0 = vsel %vm815_vm5, %v819_v12, %v825_v56  ;;  %v2868_v12 = vld [vmem:[#allocation5 + $0x30] sm:$0xff]   ;;  %v2889_v35 = vld [vmem:[#allocation5 + $0x1a8] sm:$0xff]   ;;  %v2894_v40 = vld [vmem:[#allocation5 + $0x1f8] sm:$0xff]  }
 0x17d   : > { %2627 = vmatpush3.bf16.msra.mxu0 %v2857_v53  ;;  %v3455_v1 = vsel %vm815_vm5, %v825_v56, %v831_v46  ;;  %v2893_v38 = vld [vmem:[#allocation5 + $0x228] sm:$0xff]   ;;  %v2896_v42 = vld [vmem:[#allocation5 + $0x230] sm:$0xff]   ;;  %v2895_v43 = vld [vmem:[#allocation5 + $0x1b8] sm:$0xff]  }
 0x17e   : > { %2628 = vmatprep.subr.bf16.mxu0 %v2860_v21  ;;  %v2897_v44 = vld [vmem:[#allocation5 + $0x238] sm:$0xff]  }
 0x17f   : > { %2467 = vmatpush3.bf16.msra.mxu1 %v2859_v60 }
 0x180   : > { %2621 = vmatmul.mubr.bf16.gmra.mrb[12].mxu0 %v3427_v47  ;;  %2468 = vmatprep.subr.bf16.mxu1 %v2861_v61  ;;  %v2902_v47 = vld [vmem:[#allocation7 + $0x20] sm:$0xff]  }
 0x181   : > { %2629 = vmatpush3.bf16.msra.mxu0 %v2860_v21  ;;  %2640 = vmatprep.mubr.msk.bf16.mxu0 %vm3458_vm7, %v818_v51 }
 0x182   : > { %1156 = vmatmul.mubr.bf16.gmra.mrb[8].mxu1 %v758_v49  ;;  %2630 = vmatprep.subr.bf16.mxu0 %v2863_v4 }
 0x183   : > { %2469 = vmatpush3.bf16.msra.mxu1 %v2862_v5  ;;  %1163 = vmatprep.mubr.bf16.mxu1 %v3368_v63  ;;  %v2903_v63 = vld [vmem:[#allocation7 + $0x28] sm:$0xff]  }
 0x184   : > { %2470 = vmatprep.subr.bf16.mxu1 %v2864_v2 }
 0x185   : > { %2631 = vmatpush3.bf16.msra.mxu0 %v2863_v4 }
 0x186   : > { %2632 = vmatprep.subr.bf16.mxu0 %v2866_v8 }
 0x187   : > { %2471 = vmatpush3.bf16.msra.mxu1 %v2865_v9 }
 0x188   : > { %2472 = vmatprep.subr.bf16.mxu1 %v2867_v10 }
 0x189   : > { %2633 = vmatpush3.bf16.msra.mxu0 %v2866_v8 }
 0x18a   : > { %1164 = vmatmul.mubr.bf16.gmra.mrb[12].mxu1 %v3425_v45  ;;  %2634 = vmatprep.subr.bf16.mxu0 %v2869_v11  ;;  %v2905_v45 = vld [vmem:[#allocation7 + $0x38] sm:$0xff]  }
 0x18b   : > { %2473 = vmatpush3.bf16.msra.mxu1 %v2868_v12  ;;  %2306 = vmatprep.mubr.msk.bf16.mxu1 %vm3458_vm7, %v817_v57  ;;  %v2877_v57 = vld [vmem:[#allocation5 + $0x188] sm:$0xff]  }
 0x18c   : > { %2474 = vmatprep.subr.bf16.mxu1 %v2870_v13 }
 0x18d   : > { %2635 = vmatpush3.bf16.msra.mxu0 %v2869_v11 }
 0x18e   : > { %2636 = vmatprep.subr.bf16.mxu0 %v2872_v14 }
 0x18f   : > { %2475 = vmatpush3.bf16.msra.mxu1 %v2871_v15 }
 0x190   : > { %2512 = vmatprep.subr.bf16.mxu1 %v2873_v18 }
 0x191   : > { %2637 = vmatpush3.bf16.msra.mxu0 %v2872_v14 }
 0x192   : > { %2308 = vmatmul.mubr.msk.bf16.vlgmr.msra.gmra.mrb[16].mxu1 %vm3458_vm7, %v816_v17  ;;  %2638 = vmatprep.subr.bf16.mxu0 %v2875_v19  ;;  %v2884_v17 = vld [vmem:[#allocation5 + $0x210] sm:$0xff]  }
 0x193   : > { %2513 = vmatpush3.bf16.msra.mxu1 %v2874_v20  ;;  %1421 = vmatprep.mubr.bf16.mxu1 %v3389_v16 }
 0x194   : > { %2514 = vmatprep.subr.bf16.mxu1 %v2876_v22 }
 0x195   : > { %2639 = vmatpush3.bf16.msra.mxu0 %v2875_v19 }
 0x196   : > { %2648 = vmatprep.subr.bf16.mxu0 %v2878_v32 }
 0x197   : > { %2515 = vmatpush3.bf16.msra.mxu1 %v2877_v57 }
 0x198   : > { %2641 = vmatmul.mubr.bf16.vlgmr.msra.gmra.mrb[8].mxu0 %v3436_v59  ;;  %2516 = vmatprep.subr.bf16.mxu1 %v2879_v23 }
 0x199   : > { %2644 = vmatprep.mubr.bf16.mxu0 %v3440_v62  ;;  %2649 = vmatpush3.bf16.msra.mxu0 %v2878_v32 }
 0x19a   : > { %1422 = vmatmul.mubr.bf16.gmra.mrb[20].mxu1 %v3408_v29  ;;  %2650 = vmatprep.subr.bf16.mxu0 %v2881_v24 }
 0x19b   : > { %2517 = vmatpush3.bf16.msra.mxu1 %v2880_v25  ;;  %1429 = vmatprep.mubr.bf16.mxu1 %v3412_v37 }
 0x19c   : > { %2518 = vmatprep.subr.bf16.mxu1 %v2882_v6 }
 0x19d   : > { %2651 = vmatpush3.bf16.msra.mxu0 %v2881_v24 }
 0x19e   : > { %2652 = vmatprep.subr.bf16.mxu0 %v2884_v17 }
 0x19f   : > { %2519 = vmatpush3.bf16.msra.mxu1 %v2883_v26 }
 0x1a0   : > { %2645 = vmatmul.mubr.bf16.gmra.mrb[12].mxu0 %v3445_v7  ;;  %2520 = vmatprep.subr.bf16.mxu1 %v2885_v28 }
 0x1a1   : > { %2653 = vmatpush3.bf16.msra.mxu0 %v2884_v17  ;;  %2664 = vmatprep.mubr.bf16.mxu0 %v3436_v59 }
 0x1a2   : > { %1430 = vmatmul.mubr.bf16.gmra.mrb[24].mxu1 %v3450_v0  ;;  %2654 = vmatprep.subr.bf16.mxu0 %v2887_v30 }
 0x1a3   : > { %2521 = vmatpush3.bf16.msra.mxu1 %v2886_v31  ;;  %1437 = vmatprep.mubr.bf16.mxu1 %v3420_v41 }
 0x1a4   : > { %2522 = vmatprep.subr.bf16.mxu1 %v2888_v33 }
 0x1a5   : > { %2655 = vmatpush3.bf16.msra.mxu0 %v2887_v30 }
 0x1a6   : > { %2656 = vmatprep.subr.bf16.mxu0 %v2890_v34 }
 0x1a7   : > { %2523 = vmatpush3.bf16.msra.mxu1 %v2889_v35 }
 0x1a8   : > { %2524 = vmatprep.subr.bf16.mxu1 %v2891_v36 }
 0x1a9   : > { %2657 = vmatpush3.bf16.msra.mxu0 %v2890_v34 }
 0x1aa   : > { %1438 = vmatmul.mubr.bf16.gmra.mrb[28].mxu1 %v3455_v1  ;;  %2658 = vmatprep.subr.bf16.mxu0 %v2893_v38 }
 0x1ab   : > { %2525 = vmatpush3.bf16.msra.mxu1 %v2892_v39  ;;  %1736 = vmatprep.mubr.bf16.mxu1 %v3389_v16  ;;  %v2898_v16 = vld [vmem:[#allocation7] sm:$0xff]  }
 0x1ac   : > { %2526 = vmatprep.subr.bf16.mxu1 %v2894_v40 }
 0x1ad   : > { %2659 = vmatpush3.bf16.msra.mxu0 %v2893_v38 }
 0x1ae   : > { %2660 = vmatprep.subr.bf16.mxu0 %v2896_v42 }
 0x1af   : > { %2527 = vmatpush3.bf16.msra.mxu1 %v2895_v43 }
 0x1b0   : > { %2672 = vmatprep.subr.bf16.mxu1 %v2898_v16 }
 0x1b1   : > { %2661 = vmatpush3.bf16.msra.mxu0 %v2896_v42 }
 0x1b2   : > { %1737 = vmatmul.mubr.bf16.vlgmr.msra.gmra.mrb[32].mxu1 %v3408_v29  ;;  %2662 = vmatprep.subr.bf16.mxu0 %v2897_v44  ;;  %v2899_v29 = vld [vmem:[#allocation7 + $0x8] sm:$0xff]  }
 0x1b3   : > { %1744 = vmatprep.mubr.bf16.mxu1 %v3412_v37  ;;  %2673 = vmatpush3.bf16.msra.mxu1 %v2898_v16  ;;  %v2900_v37 = vld [vmem:[#allocation7 + $0x10] sm:$0xff]  }
 0x1b4   : > { %2674 = vmatprep.subr.bf16.mxu1 %v2899_v29 }
 0x1b5   : > { %2663 = vmatpush3.bf16.msra.mxu0 %v2897_v44 }
 0x1b7   : > { %2675 = vmatpush3.bf16.msra.mxu1 %v2899_v29 }
 0x1b8   : > { %2665 = vmatmul.mubr.bf16.vlgmr.msra.gmra.mrb[8].mxu0 %v3440_v62  ;;  %2676 = vmatprep.subr.bf16.mxu1 %v2900_v37 }
 0x1b9   : > { %2668 = vmatprep.mubr.bf16.mxu0 %v3445_v7 }
 0x1ba   : > { %1745 = vmatmul.mubr.bf16.gmra.mrb[36].mxu1 %v3450_v0 }
 0x1bb   : > { %1752 = vmatprep.mubr.bf16.mxu1 %v3420_v41  ;;  %2677 = vmatpush3.bf16.msra.mxu1 %v2900_v37  ;;  %v2901_v41 = vld [vmem:[#allocation7 + $0x18] sm:$0xff]  }
 0x1bc   : > { %2678 = vmatprep.subr.bf16.mxu1 %v2901_v41 }
 0x1bf   : > { %2679 = vmatpush3.bf16.msra.mxu1 %v2901_v41 }
 0x1c0   : > { %2669 = vmatmul.mubr.msk.bf16.gmra.mrb[12].mxu0 %vm815_vm5, %v835_v55  ;;  %2680 = vmatprep.subr.bf16.mxu1 %v2902_v47 }
 0x1c2   : > { %1753 = vmatmul.mubr.bf16.gmra.mrb[40].mxu1 %v3455_v1 }
 0x1c3   : > { %2335 = vmatprep.mubr.msk.bf16.mxu1 %vm815_vm5, %v833_v27  ;;  %2681 = vmatpush3.bf16.msra.mxu1 %v2902_v47  ;;  %v2904_v27 = vld [vmem:[#allocation7 + $0x30] sm:$0xff]  }
 0x1c4   : > { %2682 = vmatprep.subr.bf16.mxu1 %v2903_v63 }
 0x1c7   : > { %2683 = vmatpush3.bf16.msra.mxu1 %v2903_v63 }
 0x1c8   : > { %2684 = vmatprep.subr.bf16.mxu1 %v2904_v27 }
 0x1ca   : > { %2336 = vmatmul.mubr.msk.bf16.gmra.mrb[44].mxu1 %vm815_vm5, %v831_v46 }
 0x1cb   : > { %2685 = vmatpush3.bf16.msra.mxu1 %v2904_v27 }
 0x1cc   : > { %2686 = vmatprep.subr.bf16.mxu1 %v2905_v45 }
 0x1cf   : > { %2687 = vmatpush3.bf16.msra.mxu1 %v2905_v45 }
 0x245   : > { %v2424_v48 = vpop.f32.mrb[0].mxu1 }
 0x246   : > { %v2425_v49 = vpop.f32.mrb[1].mxu1 }
 0x247   : > { %v2426_v50 = vadd.f32 %v2425_v49, %v2424_v48  ;;  %v2427_v51 = vpop.f32.mrb[2].mxu1 }
 0x248   : > { %v2428_v52 = vpop.f32.mrb[3].mxu1 }
 0x249   : > { %v2429_v53 = vadd.f32 %v2428_v52, %v2427_v51 }
 0x24d   : > { %v2430_v54 = vpop.f32.mrb[4].mxu1 }
 0x24e   : > { %v2431_v46 = vpop.f32.mrb[5].mxu1 }
 0x24f   : > { %v2432_v55 = vadd.f32 %v2431_v46, %v2430_v54  ;;  %v2433_v56 = vpop.f32.mrb[6].mxu1  ;;  %v3514_v54 = vld [vmem:[%s3612_s7] ss:$0 sm:$0xff] }
 0x250   : > { %v2434_v58 = vpop.f32.mrb[7].mxu1 }
 0x251   : > { %v2435_v21 = vadd.f32 %v2434_v58, %v2433_v56 }
 0x255   : > { %v2436_v59 = vpop.f32.mrb[8].mxu1 }
 0x256   : > { %v2437_v60 = vpop.f32.mrb[9].mxu1 }
 0x257   : > { %v2438_v61 = vadd.f32 %v2437_v60, %v2436_v59  ;;  %v2439_v62 = vpop.f32.mrb[10].mxu1 }
 0x258   : > { %v2440_v7 = vpop.f32.mrb[11].mxu1 }
 0x259   : > { %v2441_v0 = vadd.f32 %v2440_v7, %v2439_v62 }
 0x25d   : > { %v2442_v1 = vpop.f32.mrb[12].mxu1 }
 0x25e   : > { %v2443_v3 = vpop.f32.mrb[13].mxu1 }
 0x25f   : > { %v2444_v4 = vadd.f32 %v2443_v3, %v2442_v1  ;;  %v2445_v5 = vpop.f32.mrb[14].mxu1 }
 0x260   : > { %v2446_v2 = vpop.f32.mrb[15].mxu1 }
 0x261   : > { %v2447_v8 = vadd.f32 %v2446_v2, %v2445_v5 }
 0x265   : > { %v2476_v9 = vpop.f32.mrb[16].mxu1 }
 0x266   : > { %v2477_v10 = vpop.f32.mrb[17].mxu1 }
 0x267   : > { %v2478_v11 = vadd.f32 %v2477_v10, %v2476_v9  ;;  %v2479_v12 = vpop.f32.mrb[18].mxu1 }
 0x268   : > { %v2480_v13 = vpop.f32.mrb[19].mxu1 }
 0x269   : > { %v2699_v14 = vadd.f32 %v2478_v11, %v2426_v50  ;;  %v2481_v15 = vadd.f32 %v2480_v13, %v2479_v12  ;;  %v3509_v50 = vld [vmem:[%s3611_s6] ss:$0 sm:$0xff] }
 0x26b   : > { %v2705_v18 = vadd.f32 %v2481_v15, %v2429_v53 }
 0x26d   : > { %v2482_v19 = vpop.f32.mrb[20].mxu1 }
 0x26e   : > { %v2483_v20 = vpop.f32.mrb[21].mxu1 }
 0x26f   : > { %v2484_v22 = vadd.f32 %v2483_v20, %v2482_v19  ;;  %v2485_v32 = vpop.f32.mrb[22].mxu1 }
 0x270   : > { %v2486_v57 = vpop.f32.mrb[23].mxu1 }
 0x271   : > { %v2696_v23 = vadd.f32 %v2484_v22, %v2432_v55  ;;  %v2487_v24 = vadd.f32 %v2486_v57, %v2485_v32 }
 0x273   : > { %v2702_v25 = vadd.f32 %v2487_v24, %v2435_v21 }
 0x275   : > { %v2488_v6 = vpop.f32.mrb[24].mxu1 }
 0x276   : > { %v2489_v17 = vpop.f32.mrb[25].mxu1 }
 0x277   : > { %v2490_v26 = vadd.f32 %v2489_v17, %v2488_v6  ;;  %v2491_v28 = vpop.f32.mrb[26].mxu1 }
 0x278   : > { %v2492_v30 = vpop.f32.mrb[27].mxu1 }
 0x279   : > { %v2711_v31 = vadd.f32 %v2490_v26, %v2438_v61  ;;  %v2493_v33 = vadd.f32 %v2492_v30, %v2491_v28 }
 0x27b   : > { %v2717_v34 = vadd.f32 %v2493_v33, %v2441_v0 }
 0x27d   : > { %v2494_v35 = vpop.f32.mrb[28].mxu1 }
 0x27e   : > { %v2495_v36 = vpop.f32.mrb[29].mxu1 }
 0x27f   : > { %v2496_v38 = vadd.f32 %v2495_v36, %v2494_v35  ;;  %v2497_v39 = vpop.f32.mrb[30].mxu1 }
 0x280   : > { %v2498_v40 = vpop.f32.mrb[31].mxu1 }
 0x281   : > { %v3502_v42 = vadd.f32 %v2496_v38, %v2444_v4  ;;  %v2499_v43 = vadd.f32 %v2498_v40, %v2497_v39 }
 0x283   : > { %v3504_v44 = vadd.f32 %v2499_v43, %v2447_v8 }
 0x285   : > { %v2528_v16 = vpop.f32.mrb[32].mxu1 }
 0x286   : > { %v2529_v29 = vpop.f32.mrb[33].mxu1 }
 0x287   : > { %v2530_v37 = vadd.f32 %v2529_v29, %v2528_v16  ;;  %v2531_v41 = vpop.f32.mrb[34].mxu1 }
 0x288   : > { %v2532_v47 = vpop.f32.mrb[35].mxu1 }
 0x289   : > { %v2533_v63 = vadd.f32 %v2532_v47, %v2531_v41  ;;  %v2700_v27 = vadd.f32 %v2699_v14, %v2530_v37 }
 0x28b   : > { %v2666_v45 = vpop.f32.mrb[8].mxu0  ;;  %v2706_v48 = vadd.f32 %v2705_v18, %v2533_v63 }
 0x28c   : > { %v1803_v49 = vpop.f32.mrb[9].mxu0 }
 0x28d   : > { %v2701_v51 = vadd.f32 %v2700_v27, %v1803_v49  ;;  %v2667_v52 = vpop.f32.mrb[10].mxu0  ;;  %v2534_v53 = vpop.f32.mrb[36].mxu1 }
 0x28e   : > { %v1806_v46 = vpop.f32.mrb[11].mxu0  ;;  %v2535_v55 = vpop.f32.mrb[37].mxu1 }
 0x28f   : > { %v1849_v56 = vmul.f32 %v2701_v51, %v3509_v50  ;;  %v2707_v58 = vadd.f32 %v2706_v48, %v1806_v46  ;;  %v2536_v21 = vadd.f32 %v2535_v55, %v2534_v53  ;;  %v2537_v59 = vpop.f32.mrb[38].mxu1 }
 0x290   : > { %v2538_v60 = vpop.f32.mrb[39].mxu1 }
 0x291   : > { %v1864_v61 = vadd.f32 %v3514_v54, %v1849_v56  ;;  %v1850_v62 = vmul.f32 %v2707_v58, %v3509_v50  ;;  %v2697_v7 = vadd.f32 %v2696_v23, %v2536_v21  ;;  %v2539_v0 = vadd.f32 %v2538_v60, %v2537_v59  ;;  %v2349_v58 = vld [vmem:[%s3615_s10] ss:$0 sm:$0xff] }
 0x293   : > { %v1865_v1 = vadd.f32 %v3514_v54, %v1850_v62  ;;  %v2698_v3 = vadd.f32 %v2697_v7, %v2666_v45  ;;  %v2703_v4 = vadd.f32 %v2702_v25, %v2539_v0  ;;  %v2670_v5 = vpop.f32.mrb[12].mxu0  ;;  %v1872_v8 = vmax.f32 %v1864_v61, 0.0  ;;  %v2911_v61 = vld [vmem:[%s3302_s24] sm:$0xff]  }
 0x294   : > { %v1819_v2 = vpop.f32.mrb[13].mxu0 }
 0x295   : > { %v1873_v9 = vmax.f32 %v1865_v1, 0.0  ;;  %v1851_v10 = vmul.f32 %v2698_v3, %v3509_v50  ;;  %v2704_v11 = vadd.f32 %v2703_v4, %v2667_v52  ;;  %v2671_v12 = vpop.f32.mrb[14].mxu0  ;;  %v2540_v13 = vpop.f32.mrb[40].mxu1 }
 0x296   : > { %v1822_v14 = vpop.f32.mrb[15].mxu0  ;;  %v2541_v15 = vpop.f32.mrb[41].mxu1 }
 0x297   : > { %v1866_v18 = vadd.f32 %v3514_v54, %v1851_v10  ;;  %v1852_v19 = vmul.f32 %v2704_v11, %v3509_v50  ;;  %v2542_v20 = vadd.f32 %v2541_v15, %v2540_v13  ;;  %v2543_v22 = vpop.f32.mrb[42].mxu1  ;;  %v1880_v32 = vpack.c.bf16 %v1873_v9, %v1872_v8 }
 0x298   : > { %v2544_v57 = vpop.f32.mrb[43].mxu1 }
 0x299   : > { %v1867_v23 = vadd.f32 %v3514_v54, %v1852_v19  ;;  %v2712_v24 = vadd.f32 %v2711_v31, %v2542_v20  ;;  %v2545_v25 = vadd.f32 %v2544_v57, %v2543_v22  ;;  %2688 = vmatprep.mubr.bf16.mxu1 %v1880_v32  ;;  %v1874_v6 = vmax.f32 %v1866_v18, 0.0 }
 0x29b   : > { %v1875_v17 = vmax.f32 %v1867_v23, 0.0  ;;  %v2713_v26 = vadd.f32 %v2712_v24, %v1819_v2  ;;  %v2718_v28 = vadd.f32 %v2717_v34, %v2545_v25  ;;  %v2912_v23 = vld [vmem:[%s3302_s24 + $0x18] sm:$0xff]  }
 0x29c   : > { %v2049_v24 = vunpack.c.l.bf16 %v2912_v23 }
 0x29d   : > { %v1881_v30 = vpack.c.bf16 %v1875_v17, %v1874_v6  ;;  %v1853_v33 = vmul.f32 %v2713_v26, %v3509_v50  ;;  %v2719_v35 = vadd.f32 %v2718_v28, %v1822_v14  ;;  %v2546_v36 = vpop.f32.mrb[44].mxu1  ;;  %v2913_v17 = vld [vmem:[%s3302_s24 + $0x10] sm:$0xff]  }
 0x29e   : > { %v2547_v38 = vpop.f32.mrb[45].mxu1  ;;  %v2047_v26 = vunpack.c.l.bf16 %v2913_v17 }
 0x29f   : > { %v1854_v39 = vmul.f32 %v2719_v35, %v3509_v50  ;;  %v2548_v40 = vadd.f32 %v2547_v38, %v2546_v36  ;;  %v2549_v43 = vpop.f32.mrb[46].mxu1  ;;  %2689 = vmatmul.mubr.bf16.vlgmr.msra.gmra.mrb[48].mxu1 %v1881_v30  ;;  %v1868_v16 = vadd.f32 %v3514_v54, %v1853_v33  ;;  %v2050_v33 = vunpack.c.h.bf16 %v2912_v23 }
 0x2a0   : > { %v2550_v31 = vpop.f32.mrb[47].mxu1 }
 0x2a1   : > { %v2709_v29 = vadd.f32 %v3502_v42, %v2548_v40  ;;  %v2551_v37 = vadd.f32 %v2550_v31, %v2549_v43  ;;  %v1869_v41 = vadd.f32 %v3514_v54, %v1854_v39  ;;  %v1876_v63 = vmax.f32 %v1868_v16, 0.0 }
 0x2a2   : > { %v2048_v39 = vunpack.c.h.bf16 %v2913_v17 }
 0x2a3   : > { %v2710_v34 = vadd.f32 %v2709_v29, %v2670_v5  ;;  %v2715_v47 = vadd.f32 %v3504_v44, %v2551_v37  ;;  %v1877_v27 = vmax.f32 %v1869_v41, 0.0  ;;  %v2348_v44 = vld [vmem:[%s3614_s9] ss:$0 sm:$0xff]  ;;  %v2044_v5 = vunpack.c.h.bf16 %v2911_v61 }
 0x2a5   : > { %v1855_v45 = vmul.f32 %v2710_v34, %v3509_v50  ;;  %v2716_v48 = vadd.f32 %v2715_v47, %v2671_v12  ;;  %v1882_v49 = vpack.c.bf16 %v1877_v27, %v1876_v63 }
 0x2a7   : > { %v1856_v51 = vmul.f32 %v2716_v48, %v3509_v50  ;;  %2692 = vmatprep.mubr.bf16.mxu1 %v1882_v49  ;;  %v1870_v52 = vadd.f32 %v3514_v54, %v1855_v45  ;;  %v2910_v50 = vld [vmem:[%s3302_s24 + $0x8] sm:$0xff]   ;;  %s2121_s24 = sshll.u32 %s3545_s13, 4  ;;  %s3553_s24 = int_to_ptr.vmem [resolvable:$true] %s2121_s24 }
 0x2a8   : > { %v2045_v21 = vunpack.c.l.bf16 %v2910_v50  ;;  %v2046_v0 = vunpack.c.h.bf16 %v2910_v50  ;;  %s2998_s21 = scalar_lea.vmem %s3553_s24, 512  ;;  %p3005_p13 = scmp.lt.s32.totalorder %s3553_s24, %s3003_s16 }
 0x2a9   : > { %v1871_v42 = vadd.f32 %v3514_v54, %v1856_v51  ;;  %v1878_v53 = vmax.f32 %v1870_v52, 0.0  ;;  %v2043_v54 = vunpack.c.l.bf16 %v2911_v61  ;;  %p2999_p12 = scmp.ne.s32.totalorder %s3553_s24, %s2998_s21  ;;  %p3006_p1 = scmp.lt.s32.totalorder %s3004_s19, %s2998_s21 }
 0x2ab   : > { %v1879_v46 = vmax.f32 %v1871_v42, 0.0  ;;  %p3000_p8 = pnand %p2999_p12, %p3652_p7  ;;  %p3007_p6 = por %p3006_p1, %p3005_p13 }
 0x2ad   : > { %v1883_v55 = vpack.c.bf16 %v1879_v46, %v1878_v53  ;;  %p3001_p11 = pneg %p3000_p8 }
 0x2af   : > { %2693 = vmatmul.mubr.bf16.gmra.mrb[52].mxu1 %v1883_v55  ;;  %p3008_p9 = pnand %p3007_p6, %p3001_p11 }
 0x372   : > { %v2690_v56 = vpop.f32.mrb[48].mxu1 }
 0x373   : > { %v2022_v59 = vmul.f32 %v2690_v56, %v2348_v44  ;;  %v1982_v60 = vpop.f32.mrb[49].mxu1 }
 0x374   : > { %v2020_v62 = vmul.f32 %v2348_v44, %v1982_v60  ;;  %v2691_v7 = vpop.f32.mrb[50].mxu1 }
 0x375   : > { %v2037_v1 = vadd.f32 %v2349_v58, %v2022_v59  ;;  %v2023_v3 = vmul.f32 %v2691_v7, %v2348_v44  ;;  %v1985_v4 = vpop.f32.mrb[51].mxu1 }
 0x376   : > { %v2035_v2 = vadd.f32 %v2349_v58, %v2020_v62  ;;  %v2021_v8 = vmul.f32 %v2348_v44, %v1985_v4 }
 0x377   : > { %v2053_v9 = vadd.f32 %v2045_v21, %v2037_v1  ;;  %v2038_v10 = vadd.f32 %v2349_v58, %v2023_v3 }
 0x378   : > { %v2051_v11 = vadd.f32 %v2043_v54, %v2035_v2  ;;  %v2036_v12 = vadd.f32 %v2349_v58, %v2021_v8 }
 0x379   : > { %v2054_v13 = vadd.f32 %v2046_v0, %v2038_v10  ;;  %v2061_v15 = vmax.f32 %v2053_v9, 0.0 }
 0x37a   : > { %v2052_v14 = vadd.f32 %v2044_v5, %v2036_v12  ;;  %v2059_v19 = vmax.f32 %v2051_v11, 0.0 }
 0x37b   : > { %v2062_v18 = vmax.f32 %v2054_v13, 0.0 }
 0x37c   : > { %v2060_v20 = vmax.f32 %v2052_v14, 0.0 }
 0x37d   : > { %v2381_v22 = vpack.c.bf16 %v2062_v18, %v2061_v15 }
 0x37e   : > { %v2376_v32 = vpack.c.bf16 %v2060_v20, %v2059_v19 }
 0x37f   : > { %2393 = vst [vmem:[%s3545_s13 + $0x8] sm:$0xff] %v2381_v22  }
 0x380   : > { %2377 = vst [vmem:[%s3545_s13] sm:$0xff] %v2376_v32  }
 0x382   : > { %v2694_v57 = vpop.f32.mrb[52].mxu1 }
 0x383   : > { %v2026_v25 = vmul.f32 %v2694_v57, %v2348_v44  ;;  %v1998_v6 = vpop.f32.mrb[53].mxu1 }
 0x384   : > { %v2024_v28 = vmul.f32 %v2348_v44, %v1998_v6  ;;  %v2695_v30 = vpop.f32.mrb[54].mxu1 }
 0x385   : > { %v2041_v35 = vadd.f32 %v2349_v58, %v2026_v25  ;;  %v2027_v36 = vmul.f32 %v2695_v30, %v2348_v44  ;;  %v2001_v38 = vpop.f32.mrb[55].mxu1 }
 0x386   : > { %v2039_v40 = vadd.f32 %v2349_v58, %v2024_v28  ;;  %v2025_v43 = vmul.f32 %v2348_v44, %v2001_v38 }
 0x387   : > { %v2057_v16 = vadd.f32 %v2049_v24, %v2041_v35  ;;  %v2042_v31 = vadd.f32 %v2349_v58, %v2027_v36 }
 0x388   : > { %v2055_v29 = vadd.f32 %v2047_v26, %v2039_v40  ;;  %v2040_v37 = vadd.f32 %v2349_v58, %v2025_v43 }
 0x389   : > { %v2058_v41 = vadd.f32 %v2050_v33, %v2042_v31  ;;  %v2065_v47 = vmax.f32 %v2057_v16, 0.0 }
 0x38a   : > { %v2056_v34 = vadd.f32 %v2048_v39, %v2040_v37  ;;  %v2063_v27 = vmax.f32 %v2055_v29, 0.0 }
 0x38b   : > { %v2066_v63 = vmax.f32 %v2058_v41, 0.0 }
 0x38c   : > { %v2064_v45 = vmax.f32 %v2056_v34, 0.0 }
 0x38d   : > { %v2391_v48 = vpack.c.bf16 %v2066_v63, %v2065_v47 }
 0x38e   : > { %v2386_v49 = vpack.c.bf16 %v2064_v45, %v2063_v27 }
 0x38f   : > { %2395 = vst [vmem:[%s3545_s13 + $0x18] sm:$0xff] %v2391_v48  }
 0x390   : > { %2394 = vst [vmem:[%s3545_s13 + $0x10] sm:$0xff] %v2386_v49  }
 0x391   : > { %3011 = shalt.err (!%p3008_p9)
}
 0x392   : > { %s3012_s12 = scalar_lea.hbm %s3558_s25, 512  ;;  %s3016_s23 = scalar_lea.hbm %s3651_s28, 1024 }
 0x393   : > { %p3013_p2 = scmp.ne.s32.totalorder %s3558_s25, %s3012_s12  ;;  %p3017_p5 = scmp.lt.u32.totalorder %s3558_s25, %s3651_s28 }
 0x394   : > { %p3018_p10 = scmp.lt.u32.totalorder %s3016_s23, %s3012_s12  ;;  %p3020_p12 = scmp.lt.u32.totalorder %s3012_s12, %s3558_s25 }
 0x395   : > { %p3014_p0 = pnand %p3013_p2, %p3652_p7 }
 0x396   : > { %p3019_p4 = por %p3018_p10, %p3017_p5 }
 0x397   : > { %p3015_p3 = pneg %p3014_p0 }
 0x398   : > { %p3021_p8 = por %p3020_p12, %p3019_p4 }
 0x39a   : > { %p3022_p11 = pnand %p3021_p8, %p3015_p3 }
 0x39c   : > { %3025 = shalt.err (!%p3022_p11)
}
 0x39d   : > { %s3078_s22 = smov 64   ;;  %s3079_s26 = smov 4  }
 0x39e   : > { %2748 = dma.vmem_to_hbm [thread:$0]  (%p3652_p7), %s3553_s24, 512, %s3558_s25, %s3564_s30, %s3078_s22, %s3078_s22, %s3079_s26  }
 0x39f PF: > { %s3653_s17 = sld [smem:[#allocation14_spill]]  ;;  %s3654_s20 = sld [smem:[#allocation12_spill]] }
 0x3a0   : > { %s3655_s21 = sld [smem:[#allocation17_spill]] }
 0x3a5   : > { %p2770_p13 = scmp.ge.s32.totalorder %s3653_s17, 2  ;;  %s2136_s14 = sand.u32 1, %s3654_s20  }
 0x3a6   : > { %p3656_p1 = scmp.ne.s32.totalorder %s3655_s21, 0  ;;  %s2137_s16 = scalar_lea.sflag [#allocation4], %s2136_s14 }
 0x3a8   : > { %p2761_p6 = pnand %p2770_p13, %p3656_p1 }
 0x3aa   : > { %3051 = dma.done.wait (!%p2761_p6), %s2137_s16, 512  }
 0x3ab   : > { %3053 = vsyncadd (!%p2761_p6), %s2137_s16, 4294966784  ;;  %s3657_s20 = sld [smem:[#allocation15_spill]]  ;;  %s3658_s19 = sld [smem:[#allocation13_spill]] }
 0x3ac   : > { %s3659_s12 = sld [smem:[#allocation16_spill]]  ;;  %s3660_s17 = smov %s3060_s18 }
 0x3b1   : > { %p23_p9 = scmp.ge.s32.totalorder %s3657_s20, 4   ;;  %s3661_s18 = smov %s3658_s19 }
 0x3b2   : > { %s3662_s19 = smov %s3659_s12 }
 0x3b3   :  { %25 = sbr.rel (!%p23_p9) target bundleno = 7 (0x7), region = 114 }
 0x3ba   :  { %2142 = vsyncpa [#allocation3], 1 }
 0x3bb   :  { %2144 = vsyncpa [#allocation3 + $0x1], 1 }
 0x3bc   :  { %2145 = vsyncpa [#allocation6], 1 }
 0x3bd   :  { %2146 = vsyncpa [#allocation4], 1 }
 0x3be   :  { %2148 = vsyncpa [#allocation4 + $0x1], 1 }

</bundles_post_ra>
